<compile_context>
chip_gen: v7x
topology: tpu7x:2x2x1
jax: 0.10.0
libtpu: 0.0.40
codegen_flags: <defaults>
</compile_context>

<pallas_src>
import functools

import jax
import jax.numpy as jnp
from jax import lax
from jax.experimental import pallas as pl
from jax.experimental.pallas import tpu as pltpu

BN_EPS = 1e-5
NEG_INF = -1e30
VMEM_LIMIT_BYTES = 32 * 1024 * 1024


def _round_up(n, m):
    return ((n + m - 1) // m) * m


def _pick_tile(padded_dim):
    # padded_dim is always a multiple of 128
    for t in (512, 256, 128):
        if padded_dim % t == 0:
            return t
    return 128


def _pad2(a, rows, cols):
    return jnp.pad(a, ((0, rows - a.shape[0]), (0, cols - a.shape[1])))


def _softplus(v):
    # matches torch.nn.functional.softplus (threshold=20)
    return jnp.where(v > 20.0, v, jnp.log1p(jnp.exp(jnp.minimum(v, 20.0))))


def _fast_recip(x):
    # EUP approximate reciprocal + one Newton step (f32 accuracy, no VALU divide).
    r = pl.reciprocal(x, approx=True)
    return r * (2.0 - x * r)


def _masked_bn_rows(v, n_valid):
    # BatchNorm1d(affine=False), training mode (biased batch variance), computed over
    # the first `n_valid` rows only (padded batch rows excluded from the statistics).
    rows = v.shape[0]
    ridx = lax.broadcasted_iota(jnp.int32, (rows, 1), 0)
    msk = (ridx < n_valid).astype(v.dtype)
    inv_n = 1.0 / float(n_valid)
    mean = jnp.sum(v * msk, axis=0, keepdims=True) * inv_n
    cen = v - mean
    var = jnp.sum((cen * msk) ** 2, axis=0, keepdims=True) * inv_n
    return cen * lax.rsqrt(var + BN_EPS)


# --------------------------------------------------------------------------------------
# Kernel 1: inference network (x @ W_in streamed over vocab tiles) + reparameterization
# --------------------------------------------------------------------------------------
def _encoder_kernel(x_ref, w_in_ref, b_in_ref, w_h_ref, b_h_ref, w_ms_ref, b_ms_ref,
                    eps_ref, muls_ref, ts_ref, acc_ref, *, B, Bp, K, Kp, nk):
    k = pl.program_id(0)

    @pl.when(k == 0)
    def _():
        acc_ref[...] = jnp.zeros_like(acc_ref)

    # streamed contraction over the (padded) vocabulary axis
    acc_ref[...] += jnp.dot(x_ref[...], w_in_ref[...],
                            preferred_element_type=jnp.float32)

    @pl.when(k == nk - 1)
    def _():
        h = _softplus(acc_ref[...] + b_in_ref[...])
        h = _softplus(jnp.dot(h, w_h_ref[...], preferred_element_type=jnp.float32)
                      + b_h_ref[...])

        # fused mu|log_sigma head: a single (Bp, 2*Kp) matmul; BatchNorm is per-column
        # so both heads are normalized jointly.
        ms = jnp.dot(h, w_ms_ref[...], preferred_element_type=jnp.float32) + b_ms_ref[...]
        bn_ms = _masked_bn_rows(ms, B)
        muls_ref[...] = bn_ms                       # [:, :Kp] = mu, [:, Kp:] = log_sigma

        mu = bn_ms[:, :Kp]
        log_sigma = bn_ms[:, Kp:]
        z = mu + eps_ref[...] * jnp.exp(0.5 * log_sigma)

        # softmax over the K real topic columns (padded columns masked out)
        col = lax.broadcasted_iota(jnp.int32, (Bp, Kp), 1)
        z = jnp.where(col < K, z, NEG_INF)
        z = z - jnp.max(z, axis=1, keepdims=True)
        e = jnp.exp(z)
        theta = e * _fast_recip(jnp.sum(e, axis=1, keepdims=True))

        # perturbTheta (topic_perturb = 1): zero the per-row top-1 (first occurrence,
        # like torch.topk(k=1)) and renormalize with a clamped denominator.
        row_max = jnp.max(theta, axis=1, keepdims=True)
        first_idx = jnp.min(jnp.where(theta == row_max, col, Kp), axis=1, keepdims=True)
        tz = jnp.where(col == first_idx, 0.0, theta)
        denom = jnp.maximum(jnp.sum(tz, axis=1, keepdims=True), 1e-30)
        theta_neg = tz * _fast_recip(denom)

        ts_ref[pl.ds(0, Bp), :] = theta
        ts_ref[pl.ds(Bp, Bp), :] = theta_neg


# --------------------------------------------------------------------------------------
# Kernel 2: prodLDA decoder, tiled over vocab with a 2-pass streaming softmax
# --------------------------------------------------------------------------------------
def _decoder_kernel(ts_ref, beta_ref, out_ref, m_scr, l_scr, *, B, Bp, V, TV):
    p = pl.program_id(0)       # 0: accumulate softmax stats, 1: normalize + write
    j = pl.program_id(1)       # vocabulary tile

    @pl.when(jnp.logical_and(p == 0, j == 0))
    def _():
        m_scr[...] = jnp.full_like(m_scr, NEG_INF)
        l_scr[...] = jnp.zeros_like(l_scr)

    # one fused (2*Bp, Kp) @ (Kp, TV) matmul: rows [0, Bp) are theta, rows [Bp, 2*Bp)
    # are theta_neg -> beta is pushed through the MXU once for both branches.
    logits = jnp.dot(ts_ref[...], beta_ref[...], preferred_element_type=jnp.float32)

    # per-branch BatchNorm (training-mode batch stats) over the valid rows of each half
    ridx = lax.broadcasted_iota(jnp.int32, (2 * Bp, 1), 0)
    is_top = ridx < Bp
    local = jnp.where(is_top, ridx, ridx - Bp)
    valid = (local < B).astype(jnp.float32)
    m_top = jnp.where(is_top, valid, 0.0)
    m_bot = jnp.where(is_top, 0.0, valid)
    inv_n = 1.0 / float(B)

    mean_t = jnp.sum(logits * m_top, axis=0, keepdims=True) * inv_n
    mean_b = jnp.sum(logits * m_bot, axis=0, keepdims=True) * inv_n
    mean = jnp.where(is_top, mean_t, mean_b)
    cen = logits - mean
    var_t = jnp.sum((cen * m_top) ** 2, axis=0, keepdims=True) * inv_n
    var_b = jnp.sum((cen * m_bot) ** 2, axis=0, keepdims=True) * inv_n
    var = jnp.where(is_top, var_t, var_b)
    bn = cen * lax.rsqrt(var + BN_EPS)

    # mask padded vocabulary columns out of the softmax
    col = lax.broadcasted_iota(jnp.int32, (2 * Bp, TV), 1) + j * TV
    bn = jnp.where(col < V, bn, NEG_INF)

    @pl.when(p == 0)
    def _():
        t_max = jnp.max(bn, axis=1, keepdims=True)
        m_new = jnp.maximum(m_scr[...], t_max)
        l_scr[...] = (l_scr[...] * jnp.exp(m_scr[...] - m_new)
                      + jnp.sum(jnp.exp(bn - m_new), axis=1, keepdims=True))
        m_scr[...] = m_new

    @pl.when(p == 1)
    def _():
        out_ref[...] = jnp.exp(bn - m_scr[...]) * _fast_recip(l_scr[...])


# --------------------------------------------------------------------------------------
# Wrapper
# --------------------------------------------------------------------------------------
@jax.jit
def decoder_network_forward(x, params, eps):
    """Fused forward pass; returns the same tuple layout as the torch module."""
    (w_in, b_in, w_h, b_h, w_mu, b_mu, w_sig, b_sig,
     beta, prior_mean, prior_variance) = params

    B, V = x.shape
    K = beta.shape[0]
    H1 = w_in.shape[1]
    H2 = w_h.shape[1]
    f32 = jnp.float32

    # lane-dense / sublane-aligned padded sizes
    Bp = _round_up(B, 8)
    Kp = _round_up(K, 128)
    Vp = _round_up(V, 128)
    H1p = _round_up(H1, 128)
    H2p = _round_up(H2, 128)

    TVin = _pick_tile(Vp)   # vocab tile for the encoder contraction
    TV = _pick_tile(Vp)     # vocab tile for the decoder output
    nk = Vp // TVin
    nv = Vp // TV

    # Zero padding is exact: padded weight rows/cols are zero, padded batch rows are
    # masked out of BN statistics, padded topic/vocab columns are masked out of the
    # softmaxes inside the kernels.
    x_p = _pad2(x, Bp, Vp)
    w_in_p = _pad2(w_in, Vp, H1p)
    b_in_p = _pad2(b_in, 1, H1p)
    w_h_p = _pad2(w_h, H1p, H2p)
    b_h_p = _pad2(b_h, 1, H2p)
    w_ms_p = jnp.concatenate([_pad2(w_mu, H2p, Kp), _pad2(w_sig, H2p, Kp)], axis=1)
    b_ms_p = jnp.concatenate([_pad2(b_mu, 1, Kp), _pad2(b_sig, 1, Kp)], axis=1)
    beta_p = _pad2(beta, Kp, Vp)
    eps_p = _pad2(eps, Bp, Kp)

    # ---- encoder / inference network ----
    enc_kernel = functools.partial(_encoder_kernel, B=B, Bp=Bp, K=K, Kp=Kp, nk=nk)
    muls, ts = pl.pallas_call(
        enc_kernel,
        grid=(nk,),
        in_specs=[
            pl.BlockSpec((Bp, TVin), lambda k: (0, k)),       # x      (streamed over V)
            pl.BlockSpec((TVin, H1p), lambda k: (k, 0)),      # W_in   (streamed over V)
            pl.BlockSpec((1, H1p), lambda k: (0, 0)),         # b_in
            pl.BlockSpec((H1p, H2p), lambda k: (0, 0)),       # W_h
            pl.BlockSpec((1, H2p), lambda k: (0, 0)),         # b_h
            pl.BlockSpec((H2p, 2 * Kp), lambda k: (0, 0)),    # fused W_mu|W_sigma
            pl.BlockSpec((1, 2 * Kp), lambda k: (0, 0)),      # fused b_mu|b_sigma
            pl.BlockSpec((Bp, Kp), lambda k: (0, 0)),         # eps
        ],
        out_specs=(
            pl.BlockSpec((Bp, 2 * Kp), lambda k: (0, 0)),     # mu | log_sigma (packed)
            pl.BlockSpec((2 * Bp, Kp), lambda k: (0, 0)),     # theta ; theta_neg (stacked)
        ),
        out_shape=(
            jax.ShapeDtypeStruct((Bp, 2 * Kp), f32),
            jax.ShapeDtypeStruct((2 * Bp, Kp), f32),
        ),
        scratch_shapes=[pltpu.VMEM((Bp, H1p), jnp.float32)],
        compiler_params=pltpu.CompilerParams(
            dimension_semantics=("arbitrary",),
            vmem_limit_bytes=VMEM_LIMIT_BYTES),
    )(x_p, w_in_p, b_in_p, w_h_p, b_h_p, w_ms_p, b_ms_p, eps_p)

    # ---- decoder (prodLDA): streamed over vocab tiles, 2-pass online softmax ----
    dec_kernel = functools.partial(_decoder_kernel, B=B, Bp=Bp, V=V, TV=TV)
    wdist_all = pl.pallas_call(
        dec_kernel,
        grid=(2, nv),
        in_specs=[
            pl.BlockSpec((2 * Bp, Kp), lambda p, j: (0, 0)),  # theta ; theta_neg (resident)
            pl.BlockSpec((Kp, TV), lambda p, j: (0, j)),      # beta (streamed over V)
        ],
        # j*p keeps the output block index monotone (resident block 0 during the stats
        # pass, sequential tiles during the write pass -> no revisits / no garbage
        # writebacks).  All tiles are written during pass p == 1.
        out_specs=pl.BlockSpec((2 * Bp, TV), lambda p, j: (0, j * p)),
        out_shape=jax.ShapeDtypeStruct((2 * Bp, Vp), f32),
        scratch_shapes=[pltpu.VMEM((2 * Bp, 1), jnp.float32),   # running row max
                        pltpu.VMEM((2 * Bp, 1), jnp.float32)],  # running row sum(exp)
        compiler_params=pltpu.CompilerParams(
            dimension_semantics=("arbitrary", "arbitrary"),
            vmem_limit_bytes=VMEM_LIMIT_BYTES),
    )(ts, beta_p)

    # ---- unpad + assemble the torch-style output tuple ----
    posterior_mu = muls[:B, :K]
    posterior_log_sigma = muls[:B, Kp:Kp + K]
    posterior_sigma = jnp.exp(posterior_log_sigma)     # computed in the wrapper (no extra store)
    topic_doc = ts[:B, :K]                             # theta
    word_dist = wdist_all[:B, :V]
    word_dist_neg = wdist_all[Bp:Bp + B, :V]
    topic_word = beta

    return (prior_mean, prior_variance, posterior_mu, posterior_sigma,
            posterior_log_sigma, word_dist, topic_word, topic_doc, word_dist_neg)


# --------------------------------------------------------------------------------------
# Parameter init + plain-JAX reference (for correctness checking)
# --------------------------------------------------------------------------------------
def init_params(key, input_size, n_components, hidden_sizes,
                topic_prior_mean=0.0, topic_prior_variance=None):
    h1, h2 = hidden_sizes
    ks = jax.random.split(key, 5)

    def lin(k, fan_in, fan_out):
        kw, kb = jax.random.split(k)
        bound = 1.0 / float(fan_in) ** 0.5
        w = jax.random.uniform(kw, (fan_in, fan_out), jnp.float32, -bound, bound)
        b = jax.random.uniform(kb, (1, fan_out), jnp.float32, -bound, bound)
        return w, b

    w_in, b_in = lin(ks[0], input_size, h1)
    w_h, b_h = lin(ks[1], h1, h2)
    w_mu, b_mu = lin(ks[2], h2, n_components)
    w_sig, b_sig = lin(ks[3], h2, n_components)

    limit = (6.0 / (n_components + input_size)) ** 0.5
    beta = jax.random.uniform(ks[4], (n_components, input_size), jnp.float32,
                              -limit, limit)

    if topic_prior_variance is None:
        topic_prior_variance = 1.0 - 1.0 / n_components
    prior_mean = jnp.full((n_components,), topic_prior_mean, jnp.float32)
    prior_variance = jnp.full((n_components,), topic_prior_variance, jnp.float32)

    return (w_in, b_in, w_h, b_h, w_mu, b_mu, w_sig, b_sig,
            beta, prior_mean, prior_variance)


def reference_forward(x, params, eps):
    (w_in, b_in, w_h, b_h, w_mu, b_mu, w_sig, b_sig, beta, _pm, _pv) = params
    P = lax.Precision.HIGHEST

    def sp(v):
        return jnp.where(v > 20.0, v, jnp.log1p(jnp.exp(jnp.minimum(v, 20.0))))

    def bn(v):
        m = jnp.mean(v, axis=0, keepdims=True)
        var = jnp.mean((v - m) ** 2, axis=0, keepdims=True)
        return (v - m) / jnp.sqrt(var + BN_EPS)

    h = sp(jnp.dot(x, w_in, precision=P) + b_in)
    h = sp(jnp.dot(h, w_h, precision=P) + b_h)
    mu = bn(jnp.dot(h, w_mu, precision=P) + b_mu)
    ls = bn(jnp.dot(h, w_sig, precision=P) + b_sig)
    theta = jax.nn.softmax(mu + eps * jnp.exp(0.5 * ls), axis=1)
    idx = jnp.argmax(theta, axis=1)
    tz = theta.at[jnp.arange(theta.shape[0]), idx].set(0.0)
    theta_neg = tz / jnp.sum(tz, axis=1, keepdims=True)
    wd = jax.nn.softmax(bn(jnp.dot(theta, beta, precision=P)), axis=1)
    wdn = jax.nn.softmax(bn(jnp.dot(theta_neg, beta, precision=P)), axis=1)
    return mu, ls, theta, wd, wdn


if __name__ == "__main__":
    batch = 6            # deliberately not a multiple of 8: exercises the row-mask path
    input_size = 32      # vocabulary size (padded to 128 internally)
    n_components = 16    # topics (padded to 128 internally)
    hidden_sizes = (32, 48)

    key = jax.random.PRNGKey(0)
    k_x, k_p, k_eps = jax.random.split(key, 3)

    x = jax.random.uniform(k_x, (batch, input_size), jnp.float32, 0.0, 5.0)
    params = init_params(k_p, input_size, n_components, hidden_sizes)
    eps = jax.random.normal(k_eps, (batch, n_components), jnp.float32)

    outs = decoder_network_forward(x, params, eps)
    outs = jax.block_until_ready(outs)

    (prior_mean, prior_variance, mu, sigma, log_sigma,
     word_dist, topic_word, topic_doc, word_dist_neg) = outs

    # structural sanity checks
    assert mu.shape == (batch, n_components)
    assert sigma.shape == (batch, n_components)
    assert log_sigma.shape == (batch, n_components)
    assert topic_doc.shape == (batch, n_components)
    assert word_dist.shape == (batch, input_size)
    assert word_dist_neg.shape == (batch, input_size)
    for arr in (mu, sigma, log_sigma, topic_doc, word_dist, word_dist_neg):
        assert bool(jnp.all(jnp.isfinite(arr)))
    assert bool(jnp.allclose(jnp.sum(topic_doc, axis=1), 1.0, atol=1e-3))
    assert bool(jnp.allclose(jnp.sum(word_dist, axis=1), 1.0, atol=1e-3))
    assert bool(jnp.allclose(jnp.sum(word_dist_neg, axis=1), 1.0, atol=1e-3))

    # compare against a plain-JAX reference
    ref_mu, ref_ls, ref_theta, ref_wd, ref_wdn = reference_forward(x, params, eps)

    def check(name, got, want, atol):
        err = float(jnp.max(jnp.abs(got - want)))
        assert err <= atol, f"{name}: max abs err {err} > {atol}"

    check("posterior_mu", mu, ref_mu, 2e-2)
    check("posterior_log_sigma", log_sigma, ref_ls, 2e-2)
    check("theta", topic_doc, ref_theta, 1e-2)
    check("word_dist", word_dist, ref_wd, 1e-2)
    check("word_dist_neg", word_dist_neg, ref_wdn, 1e-2)

    print("KERNEL_OK")
</pallas_src>

<mosaic_0001>
module attributes {stable_mosaic.version = 11 : i64} {
  func.func @_encoder_kernel(%arg0: i32, %arg1: memref<8x128xf32, #tpu.memory_space<vmem>>, %arg2: memref<128x128xf32, #tpu.memory_space<vmem>>, %arg3: memref<1x128xf32, #tpu.memory_space<vmem>>, %arg4: memref<128x128xf32, #tpu.memory_space<vmem>>, %arg5: memref<1x128xf32, #tpu.memory_space<vmem>>, %arg6: memref<128x256xf32, #tpu.memory_space<vmem>>, %arg7: memref<1x256xf32, #tpu.memory_space<vmem>>, %arg8: memref<8x128xf32, #tpu.memory_space<vmem>>, %arg9: memref<8x256xf32, #tpu.memory_space<vmem>>, %arg10: memref<16x128xf32, #tpu.memory_space<vmem>>, %arg11: memref<8x128xf32, #tpu.memory_space<vmem>>) attributes {dimension_semantics = [#tpu.dimension_semantics<arbitrary>], iteration_bounds = array<i64: 1>, scalar_prefetch = 0 : i64, scratch_operands = 1 : i64, tpu.core_type = #tpu.core_type<tc>, window_params = [{transform_indices = @transform_0, window_bounds = array<i64: 8, 128>}, {transform_indices = @transform_1, window_bounds = array<i64: 128, 128>}, {pipeline_mode = #tpu.pipeline_mode<synchronous>, transform_indices = @transform_2, window_bounds = array<i64: 1, 128>}, {pipeline_mode = #tpu.pipeline_mode<synchronous>, transform_indices = @transform_3, window_bounds = array<i64: 128, 128>}, {pipeline_mode = #tpu.pipeline_mode<synchronous>, transform_indices = @transform_4, window_bounds = array<i64: 1, 128>}, {pipeline_mode = #tpu.pipeline_mode<synchronous>, transform_indices = @transform_5, window_bounds = array<i64: 128, 256>}, {pipeline_mode = #tpu.pipeline_mode<synchronous>, transform_indices = @transform_6, window_bounds = array<i64: 1, 256>}, {pipeline_mode = #tpu.pipeline_mode<synchronous>, transform_indices = @transform_7, window_bounds = array<i64: 8, 128>}, {pipeline_mode = #tpu.pipeline_mode<synchronous>, transform_indices = @transform_8, window_bounds = array<i64: 8, 256>}, {pipeline_mode = #tpu.pipeline_mode<synchronous>, transform_indices = @transform_9, window_bounds = array<i64: 16, 128>}]} {
    %c0_i32 = arith.constant 0 : i32
    %0 = arith.cmpi eq, %arg0, %c0_i32 : i32
    %1 = arith.extui %0 : i1 to i32
    %c0_i32_0 = arith.constant 0 : i32
    %2 = arith.cmpi ne, %1, %c0_i32_0 : i32
    scf.if %2 {
      %cst_10 = arith.constant 0.000000e+00 : f32
      %12 = vector.broadcast %cst_10 : f32 to vector<8x128xf32>
      %c0_11 = arith.constant 0 : index
      %c0_12 = arith.constant 0 : index
      %13 = vector.load %arg11[%c0_11, %c0_12] : memref<8x128xf32, #tpu.memory_space<vmem>>, vector<8x128xf32>
      tpu.vector_store %arg11[%c0_11, %c0_12], %12 {strides = array<i32>} : memref<8x128xf32, #tpu.memory_space<vmem>>, vector<8x128xf32>,
    } else {
    }
    %c0 = arith.constant 0 : index
    %c0_1 = arith.constant 0 : index
    %3 = vector.load %arg11[%c0, %c0_1] : memref<8x128xf32, #tpu.memory_space<vmem>>, vector<8x128xf32>
    %c0_2 = arith.constant 0 : index
    %c0_3 = arith.constant 0 : index
    %4 = vector.load %arg1[%c0_2, %c0_3] : memref<8x128xf32, #tpu.memory_space<vmem>>, vector<8x128xf32>
    %c0_4 = arith.constant 0 : index
    %c0_5 = arith.constant 0 : index
    %5 = vector.load %arg2[%c0_4, %c0_5] : memref<128x128xf32, #tpu.memory_space<vmem>>, vector<128x128xf32>
    %cst = arith.constant dense<0.000000e+00> : vector<8x128xf32>
    %6 = tpu.matmul %4, %5, %cst {dimension_numbers = #tpu.dot_dimension_numbers<[1], [0], [0], [1], [0, 0, 1, 1], [], []>} : vector<8x128xf32>, vector<128x128xf32>, vector<8x128xf32> -> vector<8x128xf32>
    %7 = arith.addf %3, %6 : vector<8x128xf32>
    %c0_6 = arith.constant 0 : index
    %c0_7 = arith.constant 0 : index
    %8 = vector.load %arg11[%c0_6, %c0_7] : memref<8x128xf32, #tpu.memory_space<vmem>>, vector<8x128xf32>
    tpu.vector_store %arg11[%c0_6, %c0_7], %7 {strides = array<i32>} : memref<8x128xf32, #tpu.memory_space<vmem>>, vector<8x128xf32>,
    %c0_i32_8 = arith.constant 0 : i32
    %9 = arith.cmpi eq, %arg0, %c0_i32_8 : i32
    %10 = arith.extui %9 : i1 to i32
    %c0_i32_9 = arith.constant 0 : i32
    %11 = arith.cmpi ne, %10, %c0_i32_9 : i32
    scf.if %11 {
      %c0_10 = arith.constant 0 : index
      %c0_11 = arith.constant 0 : index
      %12 = vector.load %arg11[%c0_10, %c0_11] : memref<8x128xf32, #tpu.memory_space<vmem>>, vector<8x128xf32>
      %c0_12 = arith.constant 0 : index
      %c0_13 = arith.constant 0 : index
      %13 = vector.load %arg3[%c0_12, %c0_13] : memref<1x128xf32, #tpu.memory_space<vmem>>, vector<1x128xf32>
      %14 = vector.broadcast %13 : vector<1x128xf32> to vector<8x128xf32>
      %15 = arith.addf %12, %14 : vector<8x128xf32>
      %cst_14 = arith.constant 2.000000e+01 : f32
      %16 = vector.broadcast %cst_14 : f32 to vector<8x128xf32>
      %17 = arith.cmpf ogt, %15, %16 : vector<8x128xf32>
      %cst_15 = arith.constant 2.000000e+01 : f32
      %18 = vector.broadcast %cst_15 : f32 to vector<8x128xf32>
      %19 = arith.minimumf %15, %18 : vector<8x128xf32>
      %20 = math.exp %19 : vector<8x128xf32>
      %21 = math.log1p %20 : vector<8x128xf32>
      %22 = arith.select %17, %15, %21 : vector<8x128xi1>, vector<8x128xf32>
      %c0_16 = arith.constant 0 : index
      %c0_17 = arith.constant 0 : index
      %23 = vector.load %arg4[%c0_16, %c0_17] : memref<128x128xf32, #tpu.memory_space<vmem>>, vector<128x128xf32>
      %cst_18 = arith.constant dense<0.000000e+00> : vector<8x128xf32>
      %24 = tpu.matmul %22, %23, %cst_18 {dimension_numbers = #tpu.dot_dimension_numbers<[1], [0], [0], [1], [0, 0, 1, 1], [], []>} : vector<8x128xf32>, vector<128x128xf32>, vector<8x128xf32> -> vector<8x128xf32>
      %c0_19 = arith.constant 0 : index
      %c0_20 = arith.constant 0 : index
      %25 = vector.load %arg5[%c0_19, %c0_20] : memref<1x128xf32, #tpu.memory_space<vmem>>, vector<1x128xf32>
      %26 = vector.broadcast %25 : vector<1x128xf32> to vector<8x128xf32>
      %27 = arith.addf %24, %26 : vector<8x128xf32>
      %cst_21 = arith.constant 2.000000e+01 : f32
      %28 = vector.broadcast %cst_21 : f32 to vector<8x128xf32>
      %29 = arith.cmpf ogt, %27, %28 : vector<8x128xf32>
      %cst_22 = arith.constant 2.000000e+01 : f32
      %30 = vector.broadcast %cst_22 : f32 to vector<8x128xf32>
      %31 = arith.minimumf %27, %30 : vector<8x128xf32>
      %32 = math.exp %31 : vector<8x128xf32>
      %33 = math.log1p %32 : vector<8x128xf32>
      %34 = arith.select %29, %27, %33 : vector<8x128xi1>, vector<8x128xf32>
      %c0_23 = arith.constant 0 : index
      %c0_24 = arith.constant 0 : index
      %35 = vector.load %arg6[%c0_23, %c0_24] : memref<128x256xf32, #tpu.memory_space<vmem>>, vector<128x256xf32>
      %cst_25 = arith.constant dense<0.000000e+00> : vector<8x256xf32>
      %36 = tpu.matmul %34, %35, %cst_25 {dimension_numbers = #tpu.dot_dimension_numbers<[1], [0], [0], [1], [0, 0, 1, 1], [], []>} : vector<8x128xf32>, vector<128x256xf32>, vector<8x256xf32> -> vector<8x256xf32>
      %c0_26 = arith.constant 0 : index
      %c0_27 = arith.constant 0 : index
      %37 = vector.load %arg7[%c0_26, %c0_27] : memref<1x256xf32, #tpu.memory_space<vmem>>, vector<1x256xf32>
      %38 = vector.broadcast %37 : vector<1x256xf32> to vector<8x256xf32>
      %39 = arith.addf %36, %38 : vector<8x256xf32>
      %40 = tpu.iota {dimensions = array<i32: 0>} : vector<8x1xi32>
      %c6_i32 = arith.constant 6 : i32
      %41 = vector.broadcast %c6_i32 : i32 to vector<8x1xi32>
      %42 = arith.cmpi slt, %40, %41 : vector<8x1xi32>
      %43 = arith.extui %42 : vector<8x1xi1> to vector<8x1xi32>
      %44 = arith.sitofp %43 : vector<8x1xi32> to vector<8x1xf32>
      %45 = vector.broadcast %44 : vector<8x1xf32> to vector<8x256xf32>
      %46 = arith.mulf %39, %45 : vector<8x256xf32>
      %cst_28 = arith.constant dense<0.000000e+00> : vector<256xf32>
      %47 = vector.multi_reduction <add>, %46, %cst_28 [0] : vector<8x256xf32> to vector<256xf32>
      %48 = vector.shape_cast %47 : vector<256xf32> to vector<1x256xf32>
      %cst_29 = arith.constant 0.166666672 : f32
      %49 = vector.broadcast %cst_29 : f32 to vector<1x256xf32>
      %50 = arith.mulf %48, %49 : vector<1x256xf32>
      %51 = vector.broadcast %50 : vector<1x256xf32> to vector<8x256xf32>
      %52 = arith.subf %39, %51 : vector<8x256xf32>
      %53 = vector.broadcast %44 : vector<8x1xf32> to vector<8x256xf32>
      %54 = arith.mulf %52, %53 : vector<8x256xf32>
      %55 = arith.mulf %54, %54 : vector<8x256xf32>
      %cst_30 = arith.constant dense<0.000000e+00> : vector<256xf32>
      %56 = vector.multi_reduction <add>, %55, %cst_30 [0] : vector<8x256xf32> to vector<256xf32>
      %57 = vector.shape_cast %56 : vector<256xf32> to vector<1x256xf32>
      %cst_31 = arith.constant 0.166666672 : f32
      %58 = vector.broadcast %cst_31 : f32 to vector<1x256xf32>
      %59 = arith.mulf %57, %58 : vector<1x256xf32>
      %cst_32 = arith.constant 9.99999974E-6 : f32
      %60 = vector.broadcast %cst_32 : f32 to vector<1x256xf32>
      %61 = arith.addf %59, %60 : vector<1x256xf32>
      %62 = math.rsqrt %61 : vector<1x256xf32>
      %63 = vector.broadcast %62 : vector<1x256xf32> to vector<8x256xf32>
      %64 = arith.mulf %52, %63 : vector<8x256xf32>
      %c0_33 = arith.constant 0 : index
      %c0_34 = arith.constant 0 : index
      %65 = vector.load %arg9[%c0_33, %c0_34] : memref<8x256xf32, #tpu.memory_space<vmem>>, vector<8x256xf32>
      tpu.vector_store %arg9[%c0_33, %c0_34], %64 {strides = array<i32>} : memref<8x256xf32, #tpu.memory_space<vmem>>, vector<8x256xf32>,
      %66 = vector.extract_strided_slice %64 {offsets = [0, 0], sizes = [8, 128], strides = [1, 1]} : vector<8x256xf32> to vector<8x128xf32>
      %67 = vector.extract_strided_slice %64 {offsets = [0, 128], sizes = [8, 128], strides = [1, 1]} : vector<8x256xf32> to vector<8x128xf32>
      %c0_35 = arith.constant 0 : index
      %c0_36 = arith.constant 0 : index
      %68 = vector.load %arg8[%c0_35, %c0_36] : memref<8x128xf32, #tpu.memory_space<vmem>>, vector<8x128xf32>
      %cst_37 = arith.constant 5.000000e-01 : f32
      %69 = vector.broadcast %cst_37 : f32 to vector<8x128xf32>
      %70 = arith.mulf %69, %67 : vector<8x128xf32>
      %71 = math.exp %70 : vector<8x128xf32>
      %72 = arith.mulf %68, %71 : vector<8x128xf32>
      %73 = arith.addf %66, %72 : vector<8x128xf32>
      %74 = tpu.iota {dimensions = array<i32: 1>} : vector<8x128xi32>
      %c16_i32 = arith.constant 16 : i32
      %75 = vector.broadcast %c16_i32 : i32 to vector<8x128xi32>
      %76 = arith.cmpi slt, %74, %75 : vector<8x128xi32>
      %cst_38 = arith.constant -1.000000e+30 : f32
      %77 = vector.broadcast %cst_38 : f32 to vector<8x128xf32>
      %78 = arith.select %76, %73, %77 : vector<8x128xi1>, vector<8x128xf32>
      %cst_39 = arith.constant dense<0xFF800000> : vector<8xf32>
      %79 = vector.multi_reduction <maximumf>, %78, %cst_39 [1] : vector<8x128xf32> to vector<8xf32>
      %80 = vector.shape_cast %79 : vector<8xf32> to vector<8x1xf32>
      %81 = vector.broadcast %80 : vector<8x1xf32> to vector<8x128xf32>
      %82 = arith.subf %78, %81 : vector<8x128xf32>
      %83 = math.exp %82 : vector<8x128xf32>
      %cst_40 = arith.constant dense<0.000000e+00> : vector<8xf32>
      %84 = vector.multi_reduction <add>, %83, %cst_40 [1] : vector<8x128xf32> to vector<8xf32>
      %85 = vector.shape_cast %84 : vector<8xf32> to vector<8x1xf32>
      %86 = tpu.reciprocal %85 {approx = true} : vector<8x1xf32> -> vector<8x1xf32>
      %87 = arith.mulf %85, %86 : vector<8x1xf32>
      %cst_41 = arith.constant 2.000000e+00 : f32
      %88 = vector.broadcast %cst_41 : f32 to vector<8x1xf32>
      %89 = arith.subf %88, %87 : vector<8x1xf32>
      %90 = arith.mulf %86, %89 : vector<8x1xf32>
      %91 = vector.broadcast %90 : vector<8x1xf32> to vector<8x128xf32>
      %92 = arith.mulf %83, %91 : vector<8x128xf32>
      %cst_42 = arith.constant dense<0xFF800000> : vector<8xf32>
      %93 = vector.multi_reduction <maximumf>, %92, %cst_42 [1] : vector<8x128xf32> to vector<8xf32>
      %94 = vector.shape_cast %93 : vector<8xf32> to vector<8x1xf32>
      %95 = vector.broadcast %94 : vector<8x1xf32> to vector<8x128xf32>
      %96 = arith.cmpf oeq, %92, %95 : vector<8x128xf32>
      %c128_i32 = arith.constant 128 : i32
      %97 = vector.broadcast %c128_i32 : i32 to vector<8x128xi32>
      %98 = arith.select %96, %74, %97 : vector<8x128xi1>, vector<8x128xi32>
      %cst_43 = arith.constant dense<2147483647> : vector<8xi32>
      %99 = vector.multi_reduction <minsi>, %98, %cst_43 [1] : vector<8x128xi32> to vector<8xi32>
      %100 = vector.shape_cast %99 : vector<8xi32> to vector<8x1xi32>
      %101 = vector.broadcast %100 : vector<8x1xi32> to vector<8x128xi32>
      %102 = arith.cmpi eq, %74, %101 : vector<8x128xi32>
      %cst_44 = arith.constant 0.000000e+00 : f32
      %103 = vector.broadcast %cst_44 : f32 to vector<8x128xf32>
      %104 = arith.select %102, %103, %92 : vector<8x128xi1>, vector<8x128xf32>
      %cst_45 = arith.constant dense<0.000000e+00> : vector<8xf32>
      %105 = vector.multi_reduction <add>, %104, %cst_45 [1] : vector<8x128xf32> to vector<8xf32>
      %106 = vector.shape_cast %105 : vector<8xf32> to vector<8x1xf32>
      %cst_46 = arith.constant 1.000000e-30 : f32
      %107 = vector.broadcast %cst_46 : f32 to vector<8x1xf32>
      %108 = arith.maximumf %106, %107 : vector<8x1xf32>
      %109 = tpu.reciprocal %108 {approx = true} : vector<8x1xf32> -> vector<8x1xf32>
      %110 = arith.mulf %108, %109 : vector<8x1xf32>
      %cst_47 = arith.constant 2.000000e+00 : f32
      %111 = vector.broadcast %cst_47 : f32 to vector<8x1xf32>
      %112 = arith.subf %111, %110 : vector<8x1xf32>
      %113 = arith.mulf %109, %112 : vector<8x1xf32>
      %114 = vector.broadcast %113 : vector<8x1xf32> to vector<8x128xf32>
      %115 = arith.mulf %104, %114 : vector<8x128xf32>
      %c0_48 = arith.constant 0 : index
      %c0_49 = arith.constant 0 : index
      %116 = vector.load %arg10[%c0_48, %c0_49] : memref<16x128xf32, #tpu.memory_space<vmem>>, vector<8x128xf32>
      tpu.vector_store %arg10[%c0_48, %c0_49], %92 {strides = array<i32>} : memref<16x128xf32, #tpu.memory_space<vmem>>, vector<8x128xf32>,
      %c8 = arith.constant 8 : index
      %c0_50 = arith.constant 0 : index
      %117 = vector.load %arg10[%c8, %c0_50] : memref<16x128xf32, #tpu.memory_space<vmem>>, vector<8x128xf32>
      tpu.vector_store %arg10[%c8, %c0_50], %115 {strides = array<i32>} : memref<16x128xf32, #tpu.memory_space<vmem>>, vector<8x128xf32>,
    } else {
    }
    return
  }
  func.func @transform_0(%arg0: i32) -> (i32, i32) {
    %c0_i32 = arith.constant 0 : i32
    %c0_i32_0 = arith.constant 0 : i32
    return %c0_i32, %arg0 : i32, i32
  }
  func.func @transform_1(%arg0: i32) -> (i32, i32) {
    %c0_i32 = arith.constant 0 : i32
    %c0_i32_0 = arith.constant 0 : i32
    return %arg0, %c0_i32 : i32, i32
  }
  func.func @transform_2(%arg0: i32) -> (i32, i32) {
    %c0_i32 = arith.constant 0 : i32
    %c0_i32_0 = arith.constant 0 : i32
    %c0_i32_1 = arith.constant 0 : i32
    return %c0_i32, %c0_i32_0 : i32, i32
  }
  func.func @transform_3(%arg0: i32) -> (i32, i32) {
    %c0_i32 = arith.constant 0 : i32
    %c0_i32_0 = arith.constant 0 : i32
    %c0_i32_1 = arith.constant 0 : i32
    return %c0_i32, %c0_i32_0 : i32, i32
  }
  func.func @transform_4(%arg0: i32) -> (i32, i32) {
    %c0_i32 = arith.constant 0 : i32
    %c0_i32_0 = arith.constant 0 : i32
    %c0_i32_1 = arith.constant 0 : i32
    return %c0_i32, %c0_i32_0 : i32, i32
  }
  func.func @transform_5(%arg0: i32) -> (i32, i32) {
    %c0_i32 = arith.constant 0 : i32
    %c0_i32_0 = arith.constant 0 : i32
    %c0_i32_1 = arith.constant 0 : i32
    return %c0_i32, %c0_i32_0 : i32, i32
  }
  func.func @transform_6(%arg0: i32) -> (i32, i32) {
    %c0_i32 = arith.constant 0 : i32
    %c0_i32_0 = arith.constant 0 : i32
    %c0_i32_1 = arith.constant 0 : i32
    return %c0_i32, %c0_i32_0 : i32, i32
  }
  func.func @transform_7(%arg0: i32) -> (i32, i32) {
    %c0_i32 = arith.constant 0 : i32
    %c0_i32_0 = arith.constant 0 : i32
    %c0_i32_1 = arith.constant 0 : i32
    return %c0_i32, %c0_i32_0 : i32, i32
  }
  func.func @transform_8(%arg0: i32) -> (i32, i32) {
    %c0_i32 = arith.constant 0 : i32
    %c0_i32_0 = arith.constant 0 : i32
    %c0_i32_1 = arith.constant 0 : i32
    return %c0_i32, %c0_i32_0 : i32, i32
  }
  func.func @transform_9(%arg0: i32) -> (i32, i32) {
    %c0_i32 = arith.constant 0 : i32
    %c0_i32_0 = arith.constant 0 : i32
    %c0_i32_1 = arith.constant 0 : i32
    return %c0_i32, %c0_i32_0 : i32, i32
  }
}

module attributes {stable_mosaic.version = 11 : i64} {
  func.func @_decoder_kernel(%arg0: i32, %arg1: i32, %arg2: memref<16x128xf32, #tpu.memory_space<vmem>>, %arg3: memref<128x128xf32, #tpu.memory_space<vmem>>, %arg4: memref<16x128xf32, #tpu.memory_space<vmem>>, %arg5: memref<16x1xf32, #tpu.memory_space<vmem>>, %arg6: memref<16x1xf32, #tpu.memory_space<vmem>>) attributes {dimension_semantics = [#tpu.dimension_semantics<arbitrary>, #tpu.dimension_semantics<arbitrary>], iteration_bounds = array<i64: 2, 1>, scalar_prefetch = 0 : i64, scratch_operands = 2 : i64, tpu.core_type = #tpu.core_type<tc>, window_params = [{pipeline_mode = #tpu.pipeline_mode<synchronous>, transform_indices = @transform_0, window_bounds = array<i64: 16, 128>}, {transform_indices = @transform_1, window_bounds = array<i64: 128, 128>}, {transform_indices = @transform_2, window_bounds = array<i64: 16, 128>}]} {
    %c0_i32 = arith.constant 0 : i32
    %0 = arith.cmpi eq, %arg0, %c0_i32 : i32
    %c0_i32_0 = arith.constant 0 : i32
    %1 = arith.cmpi eq, %arg1, %c0_i32_0 : i32
    %2 = arith.andi %0, %1 : i1
    %3 = arith.extui %2 : i1 to i32
    %c0_i32_1 = arith.constant 0 : i32
    %4 = arith.cmpi ne, %3, %c0_i32_1 : i32
    scf.if %4 {
      %cst_21 = arith.constant -1.000000e+30 : f32
      %81 = vector.broadcast %cst_21 : f32 to vector<16x1xf32>
      %c0_22 = arith.constant 0 : index
      %c0_23 = arith.constant 0 : index
      %82 = vector.load %arg5[%c0_22, %c0_23] : memref<16x1xf32, #tpu.memory_space<vmem>>, vector<16x1xf32>
      tpu.vector_store %arg5[%c0_22, %c0_23], %81 {strides = array<i32>} : memref<16x1xf32, #tpu.memory_space<vmem>>, vector<16x1xf32>,
      %cst_24 = arith.constant 0.000000e+00 : f32
      %83 = vector.broadcast %cst_24 : f32 to vector<16x1xf32>
      %c0_25 = arith.constant 0 : index
      %c0_26 = arith.constant 0 : index
      %84 = vector.load %arg6[%c0_25, %c0_26] : memref<16x1xf32, #tpu.memory_space<vmem>>, vector<16x1xf32>
      tpu.vector_store %arg6[%c0_25, %c0_26], %83 {strides = array<i32>} : memref<16x1xf32, #tpu.memory_space<vmem>>, vector<16x1xf32>,
    } else {
    }
    %c0 = arith.constant 0 : index
    %c0_2 = arith.constant 0 : index
    %5 = vector.load %arg2[%c0, %c0_2] : memref<16x128xf32, #tpu.memory_space<vmem>>, vector<16x128xf32>
    %c0_3 = arith.constant 0 : index
    %c0_4 = arith.constant 0 : index
    %6 = vector.load %arg3[%c0_3, %c0_4] : memref<128x128xf32, #tpu.memory_space<vmem>>, vector<128x128xf32>
    %cst = arith.constant dense<0.000000e+00> : vector<16x128xf32>
    %7 = tpu.matmul %5, %6, %cst {dimension_numbers = #tpu.dot_dimension_numbers<[1], [0], [0], [1], [0, 0, 1, 1], [], []>} : vector<16x128xf32>, vector<128x128xf32>, vector<16x128xf32> -> vector<16x128xf32>
    %8 = tpu.iota {dimensions = array<i32: 0>} : vector<16x1xi32>
    %c8_i32 = arith.constant 8 : i32
    %9 = vector.broadcast %c8_i32 : i32 to vector<16x1xi32>
    %10 = arith.cmpi slt, %8, %9 : vector<16x1xi32>
    %c8_i32_5 = arith.constant 8 : i32
    %11 = vector.broadcast %c8_i32_5 : i32 to vector<16x1xi32>
    %12 = arith.subi %8, %11 : vector<16x1xi32>
    %13 = arith.select %10, %8, %12 : vector<16x1xi1>, vector<16x1xi32>
    %c6_i32 = arith.constant 6 : i32
    %14 = vector.broadcast %c6_i32 : i32 to vector<16x1xi32>
    %15 = arith.cmpi slt, %13, %14 : vector<16x1xi32>
    %16 = arith.extui %15 : vector<16x1xi1> to vector<16x1xi32>
    %17 = arith.sitofp %16 : vector<16x1xi32> to vector<16x1xf32>
    %cst_6 = arith.constant 0.000000e+00 : f32
    %18 = vector.broadcast %cst_6 : f32 to vector<16x1xf32>
    %19 = arith.select %10, %17, %18 : vector<16x1xi1>, vector<16x1xf32>
    %cst_7 = arith.constant 0.000000e+00 : f32
    %20 = vector.broadcast %cst_7 : f32 to vector<16x1xf32>
    %21 = arith.select %10, %20, %17 : vector<16x1xi1>, vector<16x1xf32>
    %22 = vector.broadcast %19 : vector<16x1xf32> to vector<16x128xf32>
    %23 = arith.mulf %7, %22 : vector<16x128xf32>
    %cst_8 = arith.constant dense<0.000000e+00> : vector<128xf32>
    %24 = vector.multi_reduction <add>, %23, %cst_8 [0] : vector<16x128xf32> to vector<128xf32>
    %25 = vector.shape_cast %24 : vector<128xf32> to vector<1x128xf32>
    %cst_9 = arith.constant 0.166666672 : f32
    %26 = vector.broadcast %cst_9 : f32 to vector<1x128xf32>
    %27 = arith.mulf %25, %26 : vector<1x128xf32>
    %28 = vector.broadcast %21 : vector<16x1xf32> to vector<16x128xf32>
    %29 = arith.mulf %7, %28 : vector<16x128xf32>
    %cst_10 = arith.constant dense<0.000000e+00> : vector<128xf32>
    %30 = vector.multi_reduction <add>, %29, %cst_10 [0] : vector<16x128xf32> to vector<128xf32>
    %31 = vector.shape_cast %30 : vector<128xf32> to vector<1x128xf32>
    %cst_11 = arith.constant 0.166666672 : f32
    %32 = vector.broadcast %cst_11 : f32 to vector<1x128xf32>
    %33 = arith.mulf %31, %32 : vector<1x128xf32>
    %34 = vector.shape_cast %10 : vector<16x1xi1> to vector<16x1xi1>
    %35 = vector.broadcast %34 : vector<16x1xi1> to vector<16x128xi1>
    %36 = vector.shape_cast %27 : vector<1x128xf32> to vector<1x128xf32>
    %37 = vector.broadcast %36 : vector<1x128xf32> to vector<16x128xf32>
    %38 = vector.shape_cast %33 : vector<1x128xf32> to vector<1x128xf32>
    %39 = vector.broadcast %38 : vector<1x128xf32> to vector<16x128xf32>
    %40 = arith.select %35, %37, %39 : vector<16x128xi1>, vector<16x128xf32>
    %41 = arith.subf %7, %40 : vector<16x128xf32>
    %42 = vector.broadcast %19 : vector<16x1xf32> to vector<16x128xf32>
    %43 = arith.mulf %41, %42 : vector<16x128xf32>
    %44 = arith.mulf %43, %43 : vector<16x128xf32>
    %cst_12 = arith.constant dense<0.000000e+00> : vector<128xf32>
    %45 = vector.multi_reduction <add>, %44, %cst_12 [0] : vector<16x128xf32> to vector<128xf32>
    %46 = vector.shape_cast %45 : vector<128xf32> to vector<1x128xf32>
    %cst_13 = arith.constant 0.166666672 : f32
    %47 = vector.broadcast %cst_13 : f32 to vector<1x128xf32>
    %48 = arith.mulf %46, %47 : vector<1x128xf32>
    %49 = vector.broadcast %21 : vector<16x1xf32> to vector<16x128xf32>
    %50 = arith.mulf %41, %49 : vector<16x128xf32>
    %51 = arith.mulf %50, %50 : vector<16x128xf32>
    %cst_14 = arith.constant dense<0.000000e+00> : vector<128xf32>
    %52 = vector.multi_reduction <add>, %51, %cst_14 [0] : vector<16x128xf32> to vector<128xf32>
    %53 = vector.shape_cast %52 : vector<128xf32> to vector<1x128xf32>
    %cst_15 = arith.constant 0.166666672 : f32
    %54 = vector.broadcast %cst_15 : f32 to vector<1x128xf32>
    %55 = arith.mulf %53, %54 : vector<1x128xf32>
    %56 = vector.shape_cast %10 : vector<16x1xi1> to vector<16x1xi1>
    %57 = vector.broadcast %56 : vector<16x1xi1> to vector<16x128xi1>
    %58 = vector.shape_cast %48 : vector<1x128xf32> to vector<1x128xf32>
    %59 = vector.broadcast %58 : vector<1x128xf32> to vector<16x128xf32>
    %60 = vector.shape_cast %55 : vector<1x128xf32> to vector<1x128xf32>
    %61 = vector.broadcast %60 : vector<1x128xf32> to vector<16x128xf32>
    %62 = arith.select %57, %59, %61 : vector<16x128xi1>, vector<16x128xf32>
    %cst_16 = arith.constant 9.99999974E-6 : f32
    %63 = vector.broadcast %cst_16 : f32 to vector<16x128xf32>
    %64 = arith.addf %62, %63 : vector<16x128xf32>
    %65 = math.rsqrt %64 : vector<16x128xf32>
    %66 = arith.mulf %41, %65 : vector<16x128xf32>
    %67 = tpu.iota {dimensions = array<i32: 1>} : vector<16x128xi32>
    %c128_i32 = arith.constant 128 : i32
    %68 = arith.muli %arg1, %c128_i32 : i32
    %69 = vector.broadcast %68 : i32 to vector<16x128xi32>
    %70 = arith.addi %67, %69 : vector<16x128xi32>
    %c32_i32 = arith.constant 32 : i32
    %71 = vector.broadcast %c32_i32 : i32 to vector<16x128xi32>
    %72 = arith.cmpi slt, %70, %71 : vector<16x128xi32>
    %cst_17 = arith.constant -1.000000e+30 : f32
    %73 = vector.broadcast %cst_17 : f32 to vector<16x128xf32>
    %74 = arith.select %72, %66, %73 : vector<16x128xi1>, vector<16x128xf32>
    %c0_i32_18 = arith.constant 0 : i32
    %75 = arith.cmpi eq, %arg0, %c0_i32_18 : i32
    %76 = arith.extui %75 : i1 to i32
    %c0_i32_19 = arith.constant 0 : i32
    %77 = arith.cmpi ne, %76, %c0_i32_19 : i32
    scf.if %77 {
      %cst_21 = arith.constant dense<0xFF800000> : vector<16xf32>
      %81 = vector.multi_reduction <maximumf>, %74, %cst_21 [1] : vector<16x128xf32> to vector<16xf32>
      %82 = vector.shape_cast %81 : vector<16xf32> to vector<16x1xf32>
      %c0_22 = arith.constant 0 : index
      %c0_23 = arith.constant 0 : index
      %83 = vector.load %arg5[%c0_22, %c0_23] : memref<16x1xf32, #tpu.memory_space<vmem>>, vector<16x1xf32>
      %84 = arith.maximumf %83, %82 : vector<16x1xf32>
      %c0_24 = arith.constant 0 : index
      %c0_25 = arith.constant 0 : index
      %85 = vector.load %arg6[%c0_24, %c0_25] : memref<16x1xf32, #tpu.memory_space<vmem>>, vector<16x1xf32>
      %c0_26 = arith.constant 0 : index
      %c0_27 = arith.constant 0 : index
      %86 = vector.load %arg5[%c0_26, %c0_27] : memref<16x1xf32, #tpu.memory_space<vmem>>, vector<16x1xf32>
      %87 = arith.subf %86, %84 : vector<16x1xf32>
      %88 = math.exp %87 : vector<16x1xf32>
      %89 = arith.mulf %85, %88 : vector<16x1xf32>
      %90 = vector.broadcast %84 : vector<16x1xf32> to vector<16x128xf32>
      %91 = arith.subf %74, %90 : vector<16x128xf32>
      %92 = math.exp %91 : vector<16x128xf32>
      %cst_28 = arith.constant dense<0.000000e+00> : vector<16xf32>
      %93 = vector.multi_reduction <add>, %92, %cst_28 [1] : vector<16x128xf32> to vector<16xf32>
      %94 = vector.shape_cast %93 : vector<16xf32> to vector<16x1xf32>
      %95 = arith.addf %89, %94 : vector<16x1xf32>
      %c0_29 = arith.constant 0 : index
      %c0_30 = arith.constant 0 : index
      %96 = vector.load %arg6[%c0_29, %c0_30] : memref<16x1xf32, #tpu.memory_space<vmem>>, vector<16x1xf32>
      tpu.vector_store %arg6[%c0_29, %c0_30], %95 {strides = array<i32>} : memref<16x1xf32, #tpu.memory_space<vmem>>, vector<16x1xf32>,
      %c0_31 = arith.constant 0 : index
      %c0_32 = arith.constant 0 : index
      %97 = vector.load %arg5[%c0_31, %c0_32] : memref<16x1xf32, #tpu.memory_space<vmem>>, vector<16x1xf32>
      tpu.vector_store %arg5[%c0_31, %c0_32], %84 {strides = array<i32>} : memref<16x1xf32, #tpu.memory_space<vmem>>, vector<16x1xf32>,
    } else {
    }
    %c1_i32 = arith.constant 1 : i32
    %78 = arith.cmpi eq, %arg0, %c1_i32 : i32
    %79 = arith.extui %78 : i1 to i32
    %c0_i32_20 = arith.constant 0 : i32
    %80 = arith.cmpi ne, %79, %c0_i32_20 : i32
    scf.if %80 {
      %c0_21 = arith.constant 0 : index
      %c0_22 = arith.constant 0 : index
      %81 = vector.load %arg5[%c0_21, %c0_22] : memref<16x1xf32, #tpu.memory_space<vmem>>, vector<16x1xf32>
      %82 = vector.broadcast %81 : vector<16x1xf32> to vector<16x128xf32>
      %83 = arith.subf %74, %82 : vector<16x128xf32>
      %84 = math.exp %83 : vector<16x128xf32>
      %c0_23 = arith.constant 0 : index
      %c0_24 = arith.constant 0 : index
      %85 = vector.load %arg6[%c0_23, %c0_24] : memref<16x1xf32, #tpu.memory_space<vmem>>, vector<16x1xf32>
      %86 = tpu.reciprocal %85 {approx = true} : vector<16x1xf32> -> vector<16x1xf32>
      %87 = arith.mulf %85, %86 : vector<16x1xf32>
      %cst_25 = arith.constant 2.000000e+00 : f32
      %88 = vector.broadcast %cst_25 : f32 to vector<16x1xf32>
      %89 = arith.subf %88, %87 : vector<16x1xf32>
      %90 = arith.mulf %86, %89 : vector<16x1xf32>
      %91 = vector.broadcast %90 : vector<16x1xf32> to vector<16x128xf32>
      %92 = arith.mulf %84, %91 : vector<16x128xf32>
      %c0_26 = arith.constant 0 : index
      %c0_27 = arith.constant 0 : index
      %93 = vector.load %arg4[%c0_26, %c0_27] : memref<16x128xf32, #tpu.memory_space<vmem>>, vector<16x128xf32>
      tpu.vector_store %arg4[%c0_26, %c0_27], %92 {strides = array<i32>} : memref<16x128xf32, #tpu.memory_space<vmem>>, vector<16x128xf32>,
    } else {
    }
    return
  }
  func.func @transform_0(%arg0: i32, %arg1: i32) -> (i32, i32) {
    %c0_i32 = arith.constant 0 : i32
    %c0_i32_0 = arith.constant 0 : i32
    %c0_i32_1 = arith.constant 0 : i32
    return %c0_i32, %c0_i32_0 : i32, i32
  }
  func.func @transform_1(%arg0: i32, %arg1: i32) -> (i32, i32) {
    %c0_i32 = arith.constant 0 : i32
    %c0_i32_0 = arith.constant 0 : i32
    return %c0_i32, %arg1 : i32, i32
  }
  func.func @transform_2(%arg0: i32, %arg1: i32) -> (i32, i32) {
    %0 = arith.muli %arg1, %arg0 : i32
    %c0_i32 = arith.constant 0 : i32
    %c0_i32_0 = arith.constant 0 : i32
    return %c0_i32, %0 : i32, i32
  }
}

</mosaic_0001>

<bundles_post_ra>
// kernel: decoder_network_forward.3
= control target key start
LH: loop header
LB: loop body
LE: loop exit
PB: predicated region body
PF: predicated region fallthrough
CT: control target
= control target key end

     0   :  { %s706_s9 = smov 0   ;;  %s708_s10 = smov 0   ;;  %s812_s0 = inlined_call_operand.vmem [shape: f32[16,128], index: 0, kind: input, shape index: {}]   ;;  %s813_s1 = inlined_call_operand.vmem [shape: f32[128,128], index: 1, kind: input, shape index: {}]   ;;  %s814_s2 = inlined_call_operand.vmem [shape: f32[16,128], index: 2, kind: output, shape index: {}]  }
   0x1   :  { %s710_s11 = smov 0  }
   0x2 LB: > { %s24_s12 = sadd.s32 1, %s680_s10  ;;  %p512_p0 = scmp.ge.s32.totalorder %s684_s11, 1  ;;  %s684_s11 = sphi %s710_s11, %s12_s11   ;;  %s680_s10 = sphi %s708_s10, %s816_s10   ;;  %s676_s9 = sphi %s706_s9, %s815_s9  }
   0x3   : > { %p26_p1 = scmp.ge.s32.totalorder %s24_s12, 2  ;;  %p125_p2 = scmp.lt.s32.totalorder %s684_s11, 3 }
   0x5   : > { %s818_s12 = smov (%p26_p1, %s24_s12), 0  ;;  %p126_p3 = pnand %p512_p0, %p125_p2 }
   0x6   : > { %p156_p4 = scmp.eq.s32.totalorder (!%p126_p3), %s676_s9, 0 }
   0x7   : > { %129 = sbr.rel (%p126_p3) target bundleno = 916 (0x394), region = 28 }
   0xe   : > { %161 = sbr.rel (!%p156_p4) target bundleno = 21 (0x15), region = 32  ;;  %vm162_vm0 = vcmask (%p156_p4), 7168   ;;  %v686_v0 = vmov (%p156_p4), -1e+30   ;;  %v687_v1 = vmov (%p156_p4), 0.0  }
   0xf   : > { %163 = vst.msk [vmem:[#allocation2] sm:$0xff] (%p156_p4), %vm162_vm0, %v686_v0  ;;  %164 = vst.msk [vmem:[#allocation2 + $0x8] sm:$0xff] (%p156_p4), %vm162_vm0, %v686_v0 }
  0x10   : > { %165 = vst.msk [vmem:[#allocation3] sm:$0xff] (%p156_p4), %vm162_vm0, %v687_v1  ;;  %166 = vst.msk [vmem:[#allocation3 + $0x8] sm:$0xff] (%p156_p4), %vm162_vm0, %v687_v1 }
  0x15 PF: > { %v169_v2 = vld [vmem:[%s813_s1] sm:$0xff]  ;;  %v170_v3 = vld [vmem:[%s813_s1 + $0x8] sm:$0xff]  ;;  %v171_v4 = vld [vmem:[%s813_s1 + $0x10] sm:$0xff]  ;;  %v260_v28 = vlaneseq  ;;  %v688_v30 = vmov 0.0   ;;  %p517_p5 = scmp.ne.s32.totalorder %s676_s9, 0 }
  0x16   : > { %v577_v5 = vpack.c.bf16 %v170_v3, %v169_v2  ;;  %v172_v6 = vld [vmem:[%s813_s1 + $0x18] sm:$0xff]  ;;  %v173_v8 = vld [vmem:[%s813_s1 + $0x20] sm:$0xff]  ;;  %v174_v9 = vld [vmem:[%s813_s1 + $0x28] sm:$0xff]  ;;  %vm389_vm3 = vcmask (!%p517_p5), 7168  }
  0x17   : > { %v581_v7 = vpack.c.bf16 %v172_v6, %v171_v4  ;;  %v585_v10 = vpack.c.bf16 %v174_v9, %v173_v8  ;;  %v167_v11 = vld [vmem:[%s812_s0] sm:$0xff]  ;;  %v175_v12 = vld [vmem:[%s813_s1 + $0x30] sm:$0xff]  ;;  %v176_v13 = vld [vmem:[%s813_s1 + $0x38] sm:$0xff]  ;;  %v261_v29 = vshrl.u32 %v260_v28, 7 }
  0x18   : > { %578 = vmatprep.subr.bf16.mxu0 %v577_v5  ;;  %574 = vmatprep.mubr.f32.mxu0 %v167_v11  ;;  %v589_v14 = vpack.c.bf16 %v176_v13, %v175_v12  ;;  %v177_v15 = vld [vmem:[%s813_s1 + $0x40] sm:$0xff]  ;;  %v178_v16 = vld [vmem:[%s813_s1 + $0x48] sm:$0xff]  ;;  %v179_v18 = vld [vmem:[%s813_s1 + $0x50] sm:$0xff] }
  0x19   : > { %580 = vmatpush3.bf16.msra.mxu0 %v577_v5  ;;  %v593_v17 = vpack.c.bf16 %v178_v16, %v177_v15  ;;  %v180_v19 = vld [vmem:[%s813_s1 + $0x58] sm:$0xff]  ;;  %v181_v21 = vld [vmem:[%s813_s1 + $0x60] sm:$0xff]  ;;  %v182_v22 = vld [vmem:[%s813_s1 + $0x68] sm:$0xff]  ;;  %vm268_vm1 = vcmp.lt.s32.totalorder %v261_v29, 6 }
  0x1a   : > { %582 = vmatprep.subr.bf16.mxu0 %v581_v7  ;;  %v597_v20 = vpack.c.bf16 %v180_v19, %v179_v18  ;;  %v601_v23 = vpack.c.bf16 %v182_v22, %v181_v21  ;;  %v183_v24 = vld [vmem:[%s813_s1 + $0x70] sm:$0xff]  ;;  %v184_v25 = vld [vmem:[%s813_s1 + $0x78] sm:$0xff]  ;;  %v168_v27 = vld [vmem:[%s812_s0 + $0x8] sm:$0xff]  ;;  %v515_v31 = vsel %vm268_vm1, 1.0, %v688_v30  ;;  %v339_v18 = vand.u32 127, %v260_v28 }
  0x1b   : > { %v605_v26 = vpack.c.bf16 %v184_v25, %v183_v24  ;;  %v689_v25 = vmov (!%p517_p5), 0   ;;  %v354_v29 = vld [vmem:[#allocation2 + $0x8] sm:$0xff] (!%p517_p5) }
  0x1c   : > { %vm343_vm2 = vcmp.lt.s32.totalorder %v339_v18, 32  ;;  %642 = vset.pattern.permute.xlu1 (!%p517_p5), %v689_v25  ;;  %643 = vset.pattern.permute.xlu0 (!%p517_p5), %v689_v25 }
  0x1d   : > { %584 = vmatpush3.bf16.msra.mxu0 %v581_v7 }
  0x1e   : > { %586 = vmatprep.subr.bf16.mxu0 %v585_v10 }
  0x21   : > { %588 = vmatpush3.bf16.msra.mxu0 %v585_v10 }
  0x22   : > { %590 = vmatprep.subr.bf16.mxu0 %v589_v14 }
  0x25   : > { %592 = vmatpush3.bf16.msra.mxu0 %v589_v14 }
  0x26   : > { %594 = vmatprep.subr.bf16.mxu0 %v593_v17 }
  0x29   : > { %596 = vmatpush3.bf16.msra.mxu0 %v593_v17 }
  0x2a   : > { %598 = vmatprep.subr.bf16.mxu0 %v597_v20 }
  0x2d   : > { %600 = vmatpush3.bf16.msra.mxu0 %v597_v20 }
  0x2e   : > { %602 = vmatprep.subr.bf16.mxu0 %v601_v23 }
  0x31   : > { %604 = vmatpush3.bf16.msra.mxu0 %v601_v23 }
  0x32   : > { %606 = vmatprep.subr.bf16.mxu0 %v605_v26 }
  0x35   : > { %608 = vmatpush3.bf16.msra.mxu0 %v605_v26  ;;  %v353_v26 = vld [vmem:[#allocation2] sm:$0xff] (!%p517_p5) }
  0x38   : > { %575 = vmatmul.mubr.f32.vlgmr.msra.gmra.mrb[0].mxu0 %v168_v27 }
 0x10b   : > { %v576_v32 = vpop.f32.mrb[0].mxu0 }
 0x10c   : > { %v279_v33 = vmul.f32 0.0, %v576_v32  ;;  %v289_v34 = vmul.f32 %v576_v32, %v515_v31  ;;  %v251_v35 = vpop.f32.mrb[1].mxu0 }
 0x10d   : > { %v278_v36 = vmul.f32 %v515_v31, %v251_v35  ;;  %v288_v37 = vmul.f32 0.0, %v251_v35 }
 0x10f   : > { %v280_v38 = vadd.f32 %v279_v33, %v278_v36  ;;  %v290_v39 = vadd.f32 %v289_v34, %v288_v37 }
 0x111   : > { %v281_v40 = vrot.slane %v280_v38, 4  ;;  %v291_v41 = vrot.slane %v290_v39, 4 }
 0x113   : > { %v282_v42 = vadd.f32 %v281_v40, %v280_v38  ;;  %v292_v43 = vadd.f32 %v291_v41, %v290_v39 }
 0x115   : > { %v283_v44 = vrot.slane %v282_v42, 2  ;;  %v293_v45 = vrot.slane %v292_v43, 2 }
 0x117   : > { %v284_v46 = vadd.f32 %v283_v44, %v282_v42  ;;  %v294_v47 = vadd.f32 %v293_v45, %v292_v43  ;;  %v357_v45 = vld [vmem:[#allocation3] sm:$0xff] (!%p517_p5) }
 0x119   : > { %v285_v48 = vrot.slane %v284_v46, 1  ;;  %v295_v49 = vrot.slane %v294_v47, 1 }
 0x11b   : > { %v286_v50 = vadd.f32 %v285_v48, %v284_v46  ;;  %v296_v51 = vadd.f32 %v295_v49, %v294_v47  ;;  %v358_v49 = vld [vmem:[#allocation3 + $0x8] sm:$0xff] (!%p517_p5) }
 0x11d   : > { %v287_v52 = vmul.f32 0.16666667, %v286_v50  ;;  %v297_v53 = vmul.f32 0.16666667, %v296_v51 }
 0x11f   : > { %v304_v54 = vsub.f32 %v251_v35, %v287_v52  ;;  %v305_v55 = vsub.f32 %v576_v32, %v297_v53 }
 0x121   : > { %v306_v56 = vmul.f32 %v515_v31, %v304_v54  ;;  %v307_v57 = vmul.f32 0.0, %v305_v55  ;;  %v318_v58 = vmul.f32 0.0, %v304_v54  ;;  %v319_v59 = vmul.f32 %v515_v31, %v305_v55 }
 0x123   : > { %v308_v60 = vmul.f32 %v306_v56, %v306_v56  ;;  %v309_v61 = vmul.f32 %v307_v57, %v307_v57  ;;  %v320_v62 = vmul.f32 %v318_v58, %v318_v58  ;;  %v321_v63 = vmul.f32 %v319_v59, %v319_v59 }
 0x125   : > { %v310_v0 = vadd.f32 %v309_v61, %v308_v60  ;;  %v322_v1 = vadd.f32 %v321_v63, %v320_v62 }
 0x127   : > { %v311_v2 = vrot.slane %v310_v0, 4  ;;  %v323_v3 = vrot.slane %v322_v1, 4 }
 0x129   : > { %v312_v4 = vadd.f32 %v311_v2, %v310_v0  ;;  %v324_v5 = vadd.f32 %v323_v3, %v322_v1 }
 0x12b   : > { %v313_v6 = vrot.slane %v312_v4, 2  ;;  %v325_v7 = vrot.slane %v324_v5, 2 }
 0x12d   : > { %v314_v8 = vadd.f32 %v313_v6, %v312_v4  ;;  %v326_v9 = vadd.f32 %v325_v7, %v324_v5 }
 0x12f   : > { %v315_v10 = vrot.slane %v314_v8, 1  ;;  %v327_v11 = vrot.slane %v326_v9, 1 }
 0x131   : > { %v316_v12 = vadd.f32 %v315_v10, %v314_v8  ;;  %v328_v13 = vadd.f32 %v327_v11, %v326_v9 }
 0x133   : > { %v317_v14 = vmul.f32 0.16666667, %v316_v12  ;;  %v329_v15 = vmul.f32 0.16666667, %v328_v13 }
 0x135   : > { %v332_v16 = vadd.f32 1e-05, %v317_v14  ;;  %v333_v17 = vadd.f32 1e-05, %v329_v15 }
 0x137   : > { %638 = vrsqrt.f32 %v332_v16 }
 0x138   : > { %640 = vrsqrt.f32 %v333_v17 }
 0x13f   : > { %348 = sbr.rel (%p517_p5) target bundleno = 761 (0x2f9), region = 36 }
 0x141   : > { %v639_v19 = vpop.eup %638 }
 0x142   : > { %v641_v20 = vpop.eup %640  ;;  %v336_v21 = vmul.f32 %v639_v19, %v304_v54 }
 0x143   : > { %v337_v22 = vmul.f32 %v641_v20, %v305_v55 }
 0x144   : > { %v781_v23 = vsel %vm343_vm2, %v336_v21, -1e+30 }
 0x145   : > { %v783_v24 = vsel %vm343_vm2, %v337_v22, -1e+30  ;;  %349 = vmax.xlane.f32.xlu0 (!%p517_p5), %v781_v23 }
 0x149   : > { %351 = vmax.xlane.f32.xlu0 %v783_v24 }
 0x1d2   : > { %v350_v27 = vpop.xlane.xlu0 %349 }
 0x1d3   : > { %v355_v28 = vmax.f32 %v353_v26, %v350_v27 }
 0x1d5   : > { %v359_v30 = vsub.f32 %v353_v26, %v355_v28  ;;  %392 = vst.msk [vmem:[#allocation2] sm:$0xff] %vm389_vm3, %v355_v28  ;;  %369 = vperm.xlu1 %642, %v355_v28  }
 0x1d6   : > { %v352_v31 = vpop.xlane.xlu0 %351 }
 0x1d7   : > { %v356_v32 = vmax.f32 %v354_v29, %v352_v31  ;;  %v361_v42 = vmul.f32 1.442695, %v359_v30 }
 0x1d9   : > { %v360_v33 = vsub.f32 %v354_v29, %v356_v32  ;;  %393 = vst.msk [vmem:[#allocation2 + $0x8] sm:$0xff] %vm389_vm3, %v356_v32  ;;  %374 = vperm.xlu1 %642, %v356_v32  }
 0x1db   : > { %v363_v43 = vmul.f32 1.442695, %v360_v33 }
 0x254   : > { %v370_v34 = vpop.permute.xlu1 %369 }
 0x255   : > { %v377_v35 = vsub.f32 %v781_v23, %v370_v34 }
 0x257   : > { %v379_v36 = vmul.f32 1.442695, %v377_v35 }
 0x258   : > { %v375_v37 = vpop.permute.xlu1 %374 }
 0x259   : > { %644 = vpow2.f32 %v379_v36  ;;  %v378_v38 = vsub.f32 %v783_v24, %v375_v37 }
 0x25b   : > { %v381_v39 = vmul.f32 1.442695, %v378_v38 }
 0x25d   : > { %646 = vpow2.f32 %v381_v39 }
 0x25e   : > { %648 = vpow2.f32 %v361_v42 }
 0x25f   : > { %650 = vpow2.f32 %v363_v43 }
 0x263   : > { %v645_v40 = vpop.eup %644 }
 0x264   : > { %383 = vadd.xlane.f32.xlu0 %v645_v40 }
 0x267   : > { %v647_v41 = vpop.eup %646 }
 0x268   : > { %385 = vadd.xlane.f32.xlu1 %v647_v41  ;;  %v649_v44 = vpop.eup %648 }
 0x269   : > { %v365_v46 = vmul.f32 %v649_v44, %v357_v45  ;;  %v651_v47 = vpop.eup %650 }
 0x26a   : > { %v366_v51 = vmul.f32 %v651_v47, %v358_v49 }
 0x2f1   : > { %v384_v48 = vpop.xlane.xlu0 %383 }
 0x2f2   : > { %v387_v50 = vadd.f32 %v384_v48, %v365_v46 }
 0x2f4   : > { %390 = vst.msk [vmem:[#allocation3] sm:$0xff] %vm389_vm3, %v387_v50 }
 0x2f5   : > { %v386_v52 = vpop.xlane.xlu1 %385 }
 0x2f6   : > { %v388_v53 = vadd.f32 %v386_v52, %v366_v51 }
 0x2f8   : > { %391 = vst.msk [vmem:[#allocation3 + $0x8] sm:$0xff] %vm389_vm3, %v388_v53 }
 0x2f9 PF: > { %p518_p6 = scmp.ne.s32.totalorder %s676_s9, 1 }
 0x2fa   : > { %v398_v54 = vld [vmem:[#allocation2] sm:$0xff] (!%p518_p6)  ;;  %v690_v56 = vmov (!%p518_p6), 0   ;;  %v399_v58 = vld [vmem:[#allocation2 + $0x8] sm:$0xff] (!%p518_p6) }
 0x2fb   : > { %397 = sbr.rel (%p518_p6) target bundleno = 916 (0x394), region = 40  ;;  %v416_v55 = vld [vmem:[#allocation3] sm:$0xff] (!%p518_p6)  ;;  %652 = vset.pattern.permute.xlu0 (!%p518_p6), %v690_v56  ;;  %653 = vset.pattern.permute.xlu1 (!%p518_p6), %v690_v56 }
 0x2fc   : > { %654 = vrcp.f32 (!%p518_p6), %v416_v55  ;;  %402 = vperm.xlu0 (!%p518_p6), %652, %v398_v54  }
 0x2ff   : > { %v417_v57 = vld [vmem:[#allocation3 + $0x8] sm:$0xff] (!%p518_p6) }
 0x300   : > { %656 = vrcp.f32 (!%p518_p6), %v417_v57  ;;  %407 = vperm.xlu0 (!%p518_p6), %652, %v399_v58  }
 0x306   : > { %v655_v59 = vpop.eup %654 }
 0x307   : > { %v420_v61 = vmul.f32 %v655_v59, %v416_v55 }
 0x309   : > { %v422_v63 = vsub.f32 2.0, %v420_v61 }
 0x30a   : > { %v657_v60 = vpop.eup %656 }
 0x30b   : > { %v421_v62 = vmul.f32 %v657_v60, %v417_v57  ;;  %v424_v1 = vmul.f32 %v655_v59, %v422_v63 }
 0x30d   : > { %v423_v0 = vsub.f32 2.0, %v421_v62  ;;  %428 = vperm.xlu1 %653, %v424_v1  }
 0x30f   : > { %v425_v2 = vmul.f32 %v657_v60, %v423_v0 }
 0x311   : > { %433 = vperm.xlu1 %653, %v425_v2  }
 0x37b   : > { %v403_v3 = vpop.permute.xlu0 %402 }
 0x37c   : > { %v410_v4 = vsub.f32 %v781_v23, %v403_v3 }
 0x37e   : > { %v412_v5 = vmul.f32 1.442695, %v410_v4 }
 0x37f   : > { %v408_v6 = vpop.permute.xlu0 %407 }
 0x380   : > { %658 = vpow2.f32 %v412_v5  ;;  %v411_v7 = vsub.f32 %v783_v24, %v408_v6 }
 0x382   : > { %v414_v8 = vmul.f32 1.442695, %v411_v7 }
 0x384   : > { %660 = vpow2.f32 %v414_v8 }
 0x38a   : > { %v659_v9 = vpop.eup %658 }
 0x38c   : > { %v429_v10 = vpop.permute.xlu1 %428 }
 0x38d   : > { %v436_v11 = vmul.f32 %v659_v9, %v429_v10 }
 0x38e   : > { %v661_v12 = vpop.eup %660 }
 0x38f   : > { %438 = vst [vmem:[%s814_s2] sm:$0xff] %v436_v11 }
 0x390   : > { %v434_v13 = vpop.permute.xlu1 %433 }
 0x391   : > { %v437_v14 = vmul.f32 %v661_v12, %v434_v13 }
 0x393   : > { %439 = vst [vmem:[%s814_s2 + $0x8] sm:$0xff] %v437_v14 }
 0x394 PF: > { %s12_s11 = sadd.s32 1, %s684_s11   ;;  %s815_s9 = smov %s680_s10 }
 0x395   : > { %p9_p7 = scmp.ge.s32.totalorder %s12_s11, 4   ;;  %s816_s10 = smov %s818_s12 }
 0x397   :  { %11 = sbr.rel (!%p9_p7) target bundleno = 2 (0x2), region = 70 }

// kernel: decoder_network_forward.2
= control target key start
LH: loop header
LB: loop body
LE: loop exit
PB: predicated region body
PF: predicated region fallthrough
CT: control target
= control target key end

     0   :  { %v693_v0 = vmov 0.0|0.0   ;;  %vm694_vm0 = vmmov 0   ;;  %v695_v4 = vmov 0.0   ;;  %s987_s1 = inlined_call_operand.vmem [shape: f32[128,128], index: 1, kind: input, shape index: {}]   ;;  %s988_s0 = inlined_call_operand.vmem [shape: f32[8,128], index: 0, kind: input, shape index: {}]   ;;  %s989_s3 = inlined_call_operand.vmem [shape: f32[128,128], index: 3, kind: input, shape index: {}]   ;;  %s990_s2 = inlined_call_operand.vmem [shape: f32[1,128], index: 2, kind: input, shape index: {}]   ;;  %s991_s5 = inlined_call_operand.vmem [shape: f32[128,256], index: 5, kind: input, shape index: {}]   ;;  %s992_s4 = inlined_call_operand.vmem [shape: f32[1,128], index: 4, kind: input, shape index: {}]   ;;  %s993_s6 = inlined_call_operand.vmem [shape: f32[1,256], index: 6, kind: input, shape index: {}]   ;;  %s994_s8 = inlined_call_operand.vmem [shape: f32[8,256], index: 8, kind: output, shape index: {0}]   ;;  %s995_s7 = inlined_call_operand.vmem [shape: f32[8,128], index: 7, kind: input, shape index: {}]   ;;  %s996_s9 = inlined_call_operand.vmem [shape: f32[16,128], index: 9, kind: output, shape index: {1}]  }
   0x1   :  { %590 = vmatprep.subr.bf16.mxu0 %v693_v0  ;;  %v38_v1 = vld [vmem:[%s987_s1] sm:$0xff]  ;;  %v39_v2 = vld [vmem:[%s987_s1 + $0x8] sm:$0xff]  ;;  %v40_v3 = vld [vmem:[%s987_s1 + $0x10] sm:$0xff]  ;;  %552 = vmatprep.mubr.msk.f32.mxu0 %vm694_vm0, %v695_v4 }
   0x2   :  { %v591_v5 = vpack.c.bf16 %v39_v2, %v38_v1  ;;  %v41_v6 = vld [vmem:[%s987_s1 + $0x18] sm:$0xff]  ;;  %614 = vmatprep.subr.bf16.mxu1 %v693_v0  ;;  %587 = vmatprep.mubr.msk.f32.mxu1 %vm694_vm0, %v695_v4  ;;  %v42_v8 = vld [vmem:[%s987_s1 + $0x20] sm:$0xff]  ;;  %v43_v9 = vld [vmem:[%s987_s1 + $0x28] sm:$0xff] }
   0x3   :  { %v594_v7 = vpack.c.bf16 %v41_v6, %v40_v3  ;;  %v597_v10 = vpack.c.bf16 %v43_v9, %v42_v8  ;;  %v44_v11 = vld [vmem:[%s987_s1 + $0x30] sm:$0xff]  ;;  %v45_v12 = vld [vmem:[%s987_s1 + $0x38] sm:$0xff]  ;;  %v46_v14 = vld [vmem:[%s987_s1 + $0x40] sm:$0xff] }
   0x4   :  { %592 = vmatpush3.bf16.msra.mxu0 %v591_v5  ;;  %v600_v13 = vpack.c.bf16 %v45_v12, %v44_v11  ;;  %v47_v15 = vld [vmem:[%s987_s1 + $0x48] sm:$0xff]  ;;  %v48_v17 = vld [vmem:[%s987_s1 + $0x50] sm:$0xff]  ;;  %v49_v18 = vld [vmem:[%s987_s1 + $0x58] sm:$0xff] }
   0x5   :  { %593 = vmatprep.subr.bf16.mxu0 %v693_v0  ;;  %v603_v16 = vpack.c.bf16 %v47_v15, %v46_v14  ;;  %v606_v19 = vpack.c.bf16 %v49_v18, %v48_v17  ;;  %v50_v20 = vld [vmem:[%s987_s1 + $0x60] sm:$0xff]  ;;  %v51_v21 = vld [vmem:[%s987_s1 + $0x68] sm:$0xff]  ;;  %v52_v23 = vld [vmem:[%s987_s1 + $0x70] sm:$0xff] }
   0x6   :  { %v609_v22 = vpack.c.bf16 %v51_v21, %v50_v20  ;;  %v53_v24 = vld [vmem:[%s987_s1 + $0x78] sm:$0xff]  ;;  %v37_v26 = vld [vmem:[%s988_s0] sm:$0xff]  ;;  %v153_v28 = vld [vmem:[%s989_s3 + $0x8] sm:$0xff] }
   0x7   :  { %v612_v25 = vpack.c.bf16 %v53_v24, %v52_v23  ;;  %v152_v27 = vld [vmem:[%s989_s3] sm:$0xff]  ;;  %v154_v30 = vld [vmem:[%s989_s3 + $0x10] sm:$0xff]  ;;  %v155_v31 = vld [vmem:[%s989_s3 + $0x18] sm:$0xff] }
   0x8   :  { %595 = vmatpush3.bf16.msra.mxu0 %v594_v7  ;;  %v615_v29 = vpack.c.bf16 %v153_v28, %v152_v27  ;;  %v618_v32 = vpack.c.bf16 %v155_v31, %v154_v30  ;;  %v156_v33 = vld [vmem:[%s989_s3 + $0x20] sm:$0xff]  ;;  %v157_v34 = vld [vmem:[%s989_s3 + $0x28] sm:$0xff]  ;;  %v158_v36 = vld [vmem:[%s989_s3 + $0x30] sm:$0xff] }
   0x9   :  { %596 = vmatprep.subr.bf16.mxu0 %v693_v0  ;;  %v621_v35 = vpack.c.bf16 %v157_v34, %v156_v33  ;;  %v159_v37 = vld [vmem:[%s989_s3 + $0x38] sm:$0xff]  ;;  %v160_v39 = vld [vmem:[%s989_s3 + $0x40] sm:$0xff]  ;;  %v161_v40 = vld [vmem:[%s989_s3 + $0x48] sm:$0xff] }
   0xa   :  { %616 = vmatpush3.bf16.msra.mxu1 %v615_v29  ;;  %v624_v38 = vpack.c.bf16 %v159_v37, %v158_v36  ;;  %v627_v41 = vpack.c.bf16 %v161_v40, %v160_v39  ;;  %v162_v42 = vld [vmem:[%s989_s3 + $0x50] sm:$0xff]  ;;  %v163_v43 = vld [vmem:[%s989_s3 + $0x58] sm:$0xff]  ;;  %v164_v45 = vld [vmem:[%s989_s3 + $0x60] sm:$0xff] }
   0xb   :  { %617 = vmatprep.subr.bf16.mxu1 %v693_v0  ;;  %v630_v44 = vpack.c.bf16 %v163_v43, %v162_v42  ;;  %v165_v46 = vld [vmem:[%s989_s3 + $0x68] sm:$0xff]  ;;  %v166_v48 = vld [vmem:[%s989_s3 + $0x70] sm:$0xff]  ;;  %v167_v49 = vld [vmem:[%s989_s3 + $0x78] sm:$0xff] }
   0xc   :  { %598 = vmatpush3.bf16.msra.mxu0 %v597_v10  ;;  %v633_v47 = vpack.c.bf16 %v165_v46, %v164_v45  ;;  %v636_v50 = vpack.c.bf16 %v167_v49, %v166_v48  ;;  %v483_v51 = vld [vmem:[%s990_s2] ss:$0 sm:$0xff]  ;;  %v260_v3 = vld [vmem:[%s991_s5 + $0x8] sm:$0xff]  ;;  %v262_v5 = vld [vmem:[%s991_s5 + $0x18] sm:$0xff] }
   0xd   :  { %599 = vmatprep.subr.bf16.mxu0 %v693_v0  ;;  %v638_v6 = vpack.c.bf16 %v262_v5, %v260_v3  ;;  %v259_v7 = vld [vmem:[%s991_s5] sm:$0xff]  ;;  %v261_v8 = vld [vmem:[%s991_s5 + $0x10] sm:$0xff]  ;;  %v264_v10 = vld [vmem:[%s991_s5 + $0x28] sm:$0xff]  ;;  %v293_v5 = vlaneseq }
   0xe   :  { %619 = vmatpush3.bf16.msra.mxu1 %v618_v32  ;;  %v640_v9 = vpack.c.bf16 %v261_v8, %v259_v7  ;;  %v266_v11 = vld [vmem:[%s991_s5 + $0x38] sm:$0xff]  ;;  %v265_v14 = vld [vmem:[%s991_s5 + $0x30] sm:$0xff]  ;;  %v267_v18 = vld [vmem:[%s991_s5 + $0x40] sm:$0xff] }
   0xf   :  { %620 = vmatprep.subr.bf16.mxu1 %v693_v0  ;;  %v642_v12 = vpack.c.bf16 %v266_v11, %v264_v10  ;;  %v270_v17 = vld [vmem:[%s991_s5 + $0x58] sm:$0xff]  ;;  %v269_v20 = vld [vmem:[%s991_s5 + $0x50] sm:$0xff]  ;;  %v272_v21 = vld [vmem:[%s991_s5 + $0x68] sm:$0xff] }
  0x10   :  { %601 = vmatpush3.bf16.msra.mxu0 %v600_v13  ;;  %v263_v13 = vld [vmem:[%s991_s5 + $0x20] sm:$0xff]  ;;  %v648_v23 = vpack.c.bf16 %v269_v20, %v267_v18  ;;  %v276_v27 = vld [vmem:[%s991_s5 + $0x88] sm:$0xff]  ;;  %v278_v28 = vld [vmem:[%s991_s5 + $0x98] sm:$0xff] }
  0x11   :  { %602 = vmatprep.subr.bf16.mxu0 %v693_v0  ;;  %v644_v15 = vpack.c.bf16 %v265_v14, %v263_v13  ;;  %v654_v30 = vpack.c.bf16 %v278_v28, %v276_v27  ;;  %v275_v31 = vld [vmem:[%s991_s5 + $0x80] sm:$0xff]  ;;  %v277_v32 = vld [vmem:[%s991_s5 + $0x90] sm:$0xff]  ;;  %v280_v33 = vld [vmem:[%s991_s5 + $0xa8] sm:$0xff] }
  0x12   :  { %622 = vmatpush3.bf16.msra.mxu1 %v621_v35  ;;  %v282_v34 = vld [vmem:[%s991_s5 + $0xb8] sm:$0xff]  ;;  %v656_v35 = vpack.c.bf16 %v277_v32, %v275_v31  ;;  %v279_v37 = vld [vmem:[%s991_s5 + $0xa0] sm:$0xff]  ;;  %v284_v39 = vld [vmem:[%s991_s5 + $0xc8] sm:$0xff] }
  0x13   :  { %623 = vmatprep.subr.bf16.mxu1 %v693_v0  ;;  %v658_v36 = vpack.c.bf16 %v282_v34, %v280_v33  ;;  %v286_v40 = vld [vmem:[%s991_s5 + $0xd8] sm:$0xff]  ;;  %v283_v43 = vld [vmem:[%s991_s5 + $0xc0] sm:$0xff]  ;;  %v288_v45 = vld [vmem:[%s991_s5 + $0xe8] sm:$0xff] }
  0x14   :  { %604 = vmatpush3.bf16.msra.mxu0 %v603_v16  ;;  %v268_v16 = vld [vmem:[%s991_s5 + $0x48] sm:$0xff]  ;;  %v662_v42 = vpack.c.bf16 %v286_v40, %v284_v39  ;;  %v290_v46 = vld [vmem:[%s991_s5 + $0xf8] sm:$0xff]  ;;  %v287_v49 = vld [vmem:[%s991_s5 + $0xe0] sm:$0xff] }
  0x15   :  { %605 = vmatprep.subr.bf16.mxu0 %v693_v0  ;;  %v666_v48 = vpack.c.bf16 %v290_v46, %v288_v45  ;;  %v291_v8 = vld [vmem:[%s993_s6] sm:$0x3] }
  0x16   :  { %625 = vmatpush3.bf16.msra.mxu1 %v624_v38  ;;  %v281_v38 = vld [vmem:[%s991_s5 + $0xb0] sm:$0xff] }
  0x17   :  { %626 = vmatprep.subr.bf16.mxu1 %v693_v0 }
  0x18   :  { %607 = vmatpush3.bf16.msra.mxu0 %v606_v19  ;;  %v646_v19 = vpack.c.bf16 %v270_v17, %v268_v16 }
  0x19   :  { %608 = vmatprep.subr.bf16.mxu0 %v693_v0 }
  0x1a   :  { %628 = vmatpush3.bf16.msra.mxu1 %v627_v41  ;;  %v660_v41 = vpack.c.bf16 %v281_v38, %v279_v37 }
  0x1b   :  { %629 = vmatprep.subr.bf16.mxu1 %v693_v0 }
  0x1c   :  { %610 = vmatpush3.bf16.msra.mxu0 %v609_v22  ;;  %v274_v22 = vld [vmem:[%s991_s5 + $0x78] sm:$0xff] }
  0x1d   :  { %611 = vmatprep.subr.bf16.mxu0 %v693_v0  ;;  %v650_v24 = vpack.c.bf16 %v274_v22, %v272_v21 }
  0x1e   :  { %631 = vmatpush3.bf16.msra.mxu1 %v630_v44  ;;  %v285_v44 = vld [vmem:[%s991_s5 + $0xd0] sm:$0xff] }
  0x1f   :  { %632 = vmatprep.subr.bf16.mxu1 %v693_v0 }
  0x20   :  { %613 = vmatpush3.bf16.msra.mxu0 %v612_v25  ;;  %v271_v25 = vld [vmem:[%s991_s5 + $0x60] sm:$0xff] }
  0x21   :  { %639 = vmatprep.subr.bf16.mxu0 %v638_v6  ;;  %v294_v6 = vshrl.u32 %v293_v5, 7 }
  0x22   :  { %634 = vmatpush3.bf16.msra.mxu1 %v633_v47  ;;  %v664_v47 = vpack.c.bf16 %v285_v44, %v283_v43 }
  0x23   :  { %553 = vmatmul.mubr.f32.vlgmr.msra.gmra.mrb[0].mxu0 %v37_v26  ;;  %635 = vmatprep.subr.bf16.mxu1 %v693_v0  ;;  %v273_v26 = vld [vmem:[%s991_s5 + $0x70] sm:$0xff]  ;;  %v295_v7 = vsub.s32 0, %v294_v6  ;;  %vm376_vm5 = vcmp.lt.s32.totalorder %v294_v6, 6 }
  0x24   :  { %367 = vmatprep.mubr.f32.mxu0 %v695_v4  ;;  %641 = vmatpush1.bf16.msra.mxu0 %v640_v9  ;;  %v652_v29 = vpack.c.bf16 %v273_v26, %v271_v25  ;;  %v299_v9 = vsub.s32 1, %v294_v6  ;;  %v485_v13 = vsel %vm376_vm5, 1.0, %v695_v4 }
  0x25   :  { %643 = vmatprep.subr.bf16.mxu0 %v642_v12  ;;  %v296_v10 = vrot.slane %v291_v8, %v295_v7 }
  0x26   :  { %637 = vmatpush3.bf16.msra.mxu1 %v636_v50  ;;  %v289_v50 = vld [vmem:[%s991_s5 + $0xf0] sm:$0xff]  ;;  %v300_v11 = vrot.slane %v291_v8, %v299_v9 }
  0x28   :  { %645 = vmatpush1.bf16.msra.mxu0 %v644_v15 }
  0x29   :  { %647 = vmatprep.subr.bf16.mxu0 %v646_v19 }
  0x2c   :  { %649 = vmatpush1.bf16.msra.mxu0 %v648_v23 }
  0x2d   :  { %651 = vmatprep.subr.bf16.mxu0 %v650_v24 }
  0x30   :  { %653 = vmatpush1.bf16.msra.mxu0 %v652_v29 }
  0x31   :  { %655 = vmatprep.subr.bf16.mxu0 %v654_v30 }
  0x34   :  { %657 = vmatpush1.bf16.msra.mxu0 %v656_v35 }
  0x35   :  { %659 = vmatprep.subr.bf16.mxu0 %v658_v36 }
  0x38   :  { %661 = vmatpush1.bf16.msra.mxu0 %v660_v41 }
  0x39   :  { %663 = vmatprep.subr.bf16.mxu0 %v662_v42 }
  0x3c   :  { %665 = vmatpush1.bf16.msra.mxu0 %v664_v47 }
  0x3d   :  { %667 = vmatprep.subr.bf16.mxu0 %v666_v48 }
  0xf6   :  { %v120_v52 = vpop.f32.mrb[0].mxu0 }
  0xf7   :  { %v137_v53 = vadd.f32 %v483_v51, %v120_v52  ;;  %v554_v54 = vpop.f32.mrb[1].mxu0  ;;  %v668_v51 = vpack.c.bf16 %v289_v50, %v287_v49  ;;  %v484_v52 = vld [vmem:[%s992_s4] ss:$0 sm:$0xff] }
  0xf9   :  { %v139_v55 = vmin.f32 %v137_v53, 20.0  ;;  %vm138_vm2 = vcmp.gt.f32.partialorder %v137_v53, 20.0  ;;  %669 = vmatpush1.bf16.msra.mxu0 %v668_v51 }
  0xfb   :  { %v140_v56 = vmul.f32 1.442695, %v139_v55 }
  0xfd   :  { %673 = vpow2.f32 %v140_v56 }
 0x107   :  { %v674_v57 = vpop.eup %673 }
 0x108   :  { %v142_v58 = vadd.f32 1.0, %v674_v57  ;;  %v145_v59 = vmul.f32 -0.5, %v674_v57  ;;  %v148_v61 = vand.u32 2147483647, %v674_v57 }
 0x10a   :  { %675 = vlog2.f32 %v142_v58  ;;  %v146_v60 = vadd.f32 1.0, %v145_v59  ;;  %vm149_vm1 = vcmp.lt.f32.partialorder %v148_v61, 0.0004427343 }
 0x10c   :  { %v147_v0 = vmul.f32 %v674_v57, %v146_v60 }
 0x114   :  { %v676_v62 = vpop.eup %675 }
 0x115   :  { %v144_v63 = vmul.f32 0.6931472, %v676_v62 }
 0x117   :  { %v150_v1 = vsel %vm149_vm1, %v147_v0, %v144_v63 }
 0x118   :  { %v151_v2 = vsel %vm138_vm2, %v137_v53, %v150_v1 }
 0x119   :  { %588 = vmatmul.mubr.f32.vlgmr.msra.gmra.mrb[0].mxu1 %v151_v2 }
 0x1ec   :  { %v241_v53 = vpop.f32.mrb[0].mxu1 }
 0x1ed   :  { %v242_v54 = vadd.f32 %v484_v52, %v241_v53  ;;  %v589_v55 = vpop.f32.mrb[1].mxu1 }
 0x1ef   :  { %v246_v56 = vmin.f32 %v242_v54, 20.0  ;;  %vm245_vm4 = vcmp.gt.f32.partialorder %v242_v54, 20.0 }
 0x1f1   :  { %v247_v57 = vmul.f32 1.442695, %v246_v56 }
 0x1f3   :  { %677 = vpow2.f32 %v247_v57 }
 0x1fd   :  { %v678_v58 = vpop.eup %677 }
 0x1fe   :  { %v249_v59 = vadd.f32 1.0, %v678_v58  ;;  %v252_v60 = vmul.f32 -0.5, %v678_v58  ;;  %v255_v62 = vand.u32 2147483647, %v678_v58 }
 0x200   :  { %679 = vlog2.f32 %v249_v59  ;;  %v253_v61 = vadd.f32 1.0, %v252_v60  ;;  %vm256_vm3 = vcmp.lt.f32.partialorder %v255_v62, 0.0004427343  ;;  %v423_v60 = vld [vmem:[%s995_s7] sm:$0xff] }
 0x202   :  { %v254_v1 = vmul.f32 %v678_v58, %v253_v61  ;;  %v430_v61 = vand.u32 127, %v293_v5 }
 0x204   :  { %vm431_vm6 = vcmp.lt.s32.totalorder %v430_v61, 16 }
 0x20a   :  { %v680_v63 = vpop.eup %679 }
 0x20b   :  { %v251_v0 = vmul.f32 0.6931472, %v680_v63 }
 0x20d   :  { %v257_v2 = vsel %vm256_vm3, %v254_v1, %v251_v0 }
 0x20e   :  { %v258_v3 = vsel %vm245_vm4, %v242_v54, %v257_v2 }
 0x20f   :  { %368 = vmatmul.mubr.f32.vlgmr.msra.gmra.mrb[2].mxu0 %v258_v3 }
 0x2e2   :  { %v369_v12 = vpop.f32.mrb[2].mxu0 }
 0x2e3   :  { %v370_v14 = vadd.f32 %v369_v12, %v296_v10  ;;  %v371_v15 = vpop.f32.mrb[3].mxu0 }
 0x2e4   :  { %v372_v16 = vadd.f32 %v371_v15, %v300_v11 }
 0x2e5   :  { %v379_v17 = vmul.f32 %v485_v13, %v370_v14 }
 0x2e6   :  { %v380_v18 = vmul.f32 %v485_v13, %v372_v16 }
 0x2e7   :  { %v381_v19 = vrot.slane %v379_v17, 4 }
 0x2e8   :  { %v387_v20 = vrot.slane %v380_v18, 4 }
 0x2e9   :  { %v382_v21 = vadd.f32 %v381_v19, %v379_v17 }
 0x2ea   :  { %v388_v22 = vadd.f32 %v387_v20, %v380_v18 }
 0x2eb   :  { %v383_v23 = vrot.slane %v382_v21, 2 }
 0x2ec   :  { %v389_v24 = vrot.slane %v388_v22, 2 }
 0x2ed   :  { %v384_v25 = vadd.f32 %v383_v23, %v382_v21 }
 0x2ee   :  { %v390_v26 = vadd.f32 %v389_v24, %v388_v22 }
 0x2ef   :  { %v385_v27 = vrot.slane %v384_v25, 1 }
 0x2f0   :  { %v391_v28 = vrot.slane %v390_v26, 1 }
 0x2f1   :  { %v386_v29 = vadd.f32 %v385_v27, %v384_v25 }
 0x2f2   :  { %v392_v30 = vadd.f32 %v391_v28, %v390_v26 }
 0x2f3   :  { %v393_v31 = vmul.f32 0.16666667, %v386_v29 }
 0x2f4   :  { %v394_v32 = vmul.f32 0.16666667, %v392_v30 }
 0x2f5   :  { %v395_v4 = vsub.f32 %v370_v14, %v393_v31 }
 0x2f6   :  { %v396_v33 = vsub.f32 %v372_v16, %v394_v32 }
 0x2f7   :  { %v397_v34 = vmul.f32 %v485_v13, %v395_v4 }
 0x2f8   :  { %v398_v35 = vmul.f32 %v485_v13, %v396_v33 }
 0x2f9   :  { %v399_v36 = vmul.f32 %v397_v34, %v397_v34 }
 0x2fa   :  { %v400_v37 = vmul.f32 %v398_v35, %v398_v35 }
 0x2fb   :  { %v401_v38 = vrot.slane %v399_v36, 4 }
 0x2fc   :  { %v407_v39 = vrot.slane %v400_v37, 4 }
 0x2fd   :  { %v402_v40 = vadd.f32 %v401_v38, %v399_v36 }
 0x2fe   :  { %v408_v41 = vadd.f32 %v407_v39, %v400_v37 }
 0x2ff   :  { %v403_v42 = vrot.slane %v402_v40, 2 }
 0x300   :  { %v409_v43 = vrot.slane %v408_v41, 2 }
 0x301   :  { %v404_v44 = vadd.f32 %v403_v42, %v402_v40 }
 0x302   :  { %v410_v45 = vadd.f32 %v409_v43, %v408_v41 }
 0x303   :  { %v405_v46 = vrot.slane %v404_v44, 1 }
 0x304   :  { %v411_v47 = vrot.slane %v410_v45, 1 }
 0x305   :  { %v406_v48 = vadd.f32 %v405_v46, %v404_v44 }
 0x306   :  { %v412_v49 = vadd.f32 %v411_v47, %v410_v45 }
 0x307   :  { %v413_v50 = vmul.f32 0.16666667, %v406_v48 }
 0x308   :  { %v414_v51 = vmul.f32 0.16666667, %v412_v49 }
 0x309   :  { %v415_v52 = vadd.f32 1e-05, %v413_v50 }
 0x30a   :  { %v416_v53 = vadd.f32 1e-05, %v414_v51 }
 0x30b   :  { %681 = vrsqrt.f32 %v415_v52 }
 0x30c   :  { %683 = vrsqrt.f32 %v416_v53 }
 0x315   :  { %v682_v54 = vpop.eup %681 }
 0x316   :  { %v684_v55 = vpop.eup %683  ;;  %v419_v56 = vmul.f32 %v682_v54, %v395_v4 }
 0x317   :  { %v420_v57 = vmul.f32 %v684_v55, %v396_v33 }
 0x318   :  { %421 = vst [vmem:[%s994_s8] sm:$0xff] %v419_v56 }
 0x319   :  { %422 = vst [vmem:[%s994_s8 + $0x8] sm:$0xff] %v420_v57  ;;  %v424_v58 = vmul.f32 0.5, %v420_v57 }
 0x31b   :  { %v425_v59 = vmul.f32 1.442695, %v424_v58 }
 0x31d   :  { %685 = vpow2.f32 %v425_v59 }
 0x327   :  { %v686_v62 = vpop.eup %685 }
 0x328   :  { %v427_v63 = vmul.f32 %v686_v62, %v423_v60 }
 0x32a   :  { %v428_v0 = vadd.f32 %v427_v63, %v419_v56 }
 0x32c   :  { %v432_v1 = vsel %vm431_vm6, %v428_v0, -1e+30 }
 0x32d   :  { %433 = vmax.xlane.f32.xlu0 %v432_v1 }
 0x3ba   :  { %v434_v2 = vpop.xlane.xlu0 %433 }
 0x3bb   :  { %v435_v3 = vsub.f32 %v432_v1, %v434_v2 }
 0x3bd   :  { %v436_v6 = vmul.f32 1.442695, %v435_v3 }
 0x3bf   :  { %687 = vpow2.f32 %v436_v6 }
 0x3c9   :  { %v688_v7 = vpop.eup %687 }
 0x3ca   :  { %438 = vadd.xlane.f32.xlu0 %v688_v7 }
 0x457   :  { %v439_v8 = vpop.xlane.xlu0 %438 }
 0x458   :  { %689 = vrcp.f32 %v439_v8 }
 0x462   :  { %v690_v9 = vpop.eup %689 }
 0x463   :  { %v441_v10 = vmul.f32 %v690_v9, %v439_v8 }
 0x465   :  { %v442_v11 = vsub.f32 2.0, %v441_v10 }
 0x467   :  { %v443_v12 = vmul.f32 %v690_v9, %v442_v11 }
 0x469   :  { %v444_v13 = vmul.f32 %v688_v7, %v443_v12 }
 0x46b   :  { %445 = vmax.xlane.f32.xlu1 %v444_v13  ;;  %473 = vst [vmem:[%s996_s9] sm:$0xff] %v444_v13 }
 0x4f8   :  { %v446_v5 = vpop.xlane.xlu1 %445 }
 0x4f9   :  { %vm447_vm7 = vcmp.eq.f32.partialorder %v444_v13, %v446_v5 }
 0x4fa   :  { %v448_v14 = vsel %vm447_vm7, %v430_v61, 128 }
 0x4fb   :  { %v450_v15 = vshra.s32 %v448_v14, 16  ;;  %v449_v17 = vand.u32 65535, %v448_v14 }
 0x4fd   :  { %v452_v16 = vcvt.s32.f32 %v450_v15  ;;  %v451_v19 = vcvt.s32.f32 %v449_v17 }
 0x4ff   :  { %453 = vmin.xlane.f32.xlu1 %v452_v16 }
 0x58c   :  { %v454_v18 = vpop.xlane.xlu1 %453 }
 0x58d   :  { %vm455_vm8 = vcmp.eq.f32.partialorder %v452_v16, %v454_v18  ;;  %v460_v21 = vcvt.f32.s32 %v454_v18 }
 0x58e   :  { %v456_v20 = vsel %vm455_vm8, %v451_v19, inf }
 0x58f   :  { %457 = vmin.xlane.f32.xlu0 %v456_v20  ;;  %v461_v23 = vshll.u32 %v460_v21, 16 }
 0x61c   :  { %v458_v22 = vpop.xlane.xlu0 %457 }
 0x61d   :  { %v459_v24 = vcvt.f32.s32 %v458_v22 }
 0x61f   :  { %v462_v25 = vadd.s32 %v461_v23, %v459_v24 }
 0x621   :  { %vm463_vm9 = vcmp.eq.s32.totalorder %v430_v61, %v462_v25 }
 0x622   :  { %v464_v26 = vsel %vm463_vm9, 0.0, %v444_v13 }
 0x623   :  { %465 = vadd.xlane.f32.xlu1 %v464_v26 }
 0x6b0   :  { %v466_v27 = vpop.xlane.xlu1 %465 }
 0x6b1   :  { %v467_v28 = vmax.f32 %v466_v27, 1e-30 }
 0x6b3   :  { %691 = vrcp.f32 %v467_v28 }
 0x6bd   :  { %v692_v29 = vpop.eup %691 }
 0x6be   :  { %v469_v30 = vmul.f32 %v692_v29, %v467_v28 }
 0x6c0   :  { %v470_v31 = vsub.f32 2.0, %v469_v30 }
 0x6c2   :  { %v471_v32 = vmul.f32 %v692_v29, %v470_v31 }
 0x6c4   :  { %v472_v4 = vmul.f32 %v471_v32, %v464_v26 }
 0x6c6   :  { %474 = vst [vmem:[%s996_s9 + $0x8] sm:$0xff] %v472_v4 }

</bundles_post_ra>
